<compile_context>
chip_gen: v7x
topology: tpu7x:2x2x1
jax: 0.10.0
libtpu: 0.0.40
codegen_flags: <defaults>
</compile_context>

<pallas_src>
import math

import jax
import jax.numpy as jnp
import numpy as np
from jax import lax
from jax.experimental import pallas as pl
from jax.experimental.pallas import tpu as pltpu


def sse_kernel(code_ref,                         # (Bb, T, 1) int32 metadata
               kst_ref,                          # (Bb, 1, 1) int32 k_star
               x_ref,                            # (Bb, T, D) feature block
               wi_ref, bi_ref,                   # (D, D) pre-transposed, (1, D)
               wq_ref, bq_ref,                   # (D, D) pre-transposed, (1, D)
               ww_ref,                           # (1, D) row of W (bias cancels)
               wo_ref, bo_ref,                   # (D, D) pre-transposed, (1, D)
               out_ref,                          # (Bb, T, D); doubles as v_inter
               f_ref, qw_ref):                   # VMEM scratch (Bb, T, D) x 2
    Bb, T, D = f_ref.shape

    # ---- prologue: f = relu(init_trans(x)); q = (f Wq + bq) * Ww (folded) --
    x2 = x_ref[...].reshape(Bb * T, D)
    f2 = jnp.maximum(
        jnp.dot(x2, wi_ref[...], preferred_element_type=jnp.float32) + bi_ref[...],
        0.0)
    f3 = f2.reshape(Bb, T, D)
    f_ref[...] = f3
    qw2 = (jnp.dot(f2, wq_ref[...], preferred_element_type=jnp.float32)
           + bq_ref[...]) * ww_ref[...]
    qw_ref[...] = qw2.reshape(Bb, T, D)

    # ---- j == 0 branch, vectorized over the batch block --------------------
    # v[b, t] = f[b, t] iff t == 0 or t == k_star[b]; else 0.
    t_sub = lax.broadcasted_iota(jnp.int32, (1, T, 1), 1)             # (1,T,1)
    init_mask = jnp.logical_or(t_sub == 0, t_sub == kst_ref[...])     # (Bb,T,1)
    out_ref[...] = f3 * init_mask.astype(jnp.float32)                 # v buffer

    # ---- serial recurrence over time; all Bb batches each step -------------
    # code[b, j] >= 0 : attend over v[b, code:j]  (active & mark found)
    # code[b, j] == -1: copy f[b, j]              (active & no mark)
    # code[b, j] == -2: keep old value            (umask "break" reached)
    def body(j, carry):
        cj = code_ref[:, pl.ds(j, 1), :]                              # (Bb,1,1)
        qj = qw_ref[:, pl.ds(j, 1), :]                                # (Bb,1,D)
        v_all = out_ref[...]                                          # (Bb,T,D)

        # s[b,t] = sum_d v[b,t,d] * q[b,j,d]*Ww[d]   (batched MXU mat-vec)
        s = jnp.einsum('btd,bqd->btq', v_all, qj,
                       preferred_element_type=jnp.float32)            # (Bb,T,1)
        window = jnp.logical_and(t_sub >= cj, t_sub < j)              # (Bb,T,1)
        s_m = jnp.where(window, s, -1e30)
        p = jnp.where(window,
                      jnp.exp(s_m - jnp.max(s_m, axis=1, keepdims=True)), 0.0)
        alpha = p / jnp.sum(p, axis=1, keepdims=True)                 # (Bb,T,1)
        attn = jnp.einsum('btq,btd->bqd', alpha, v_all,
                          preferred_element_type=jnp.float32)         # (Bb,1,D)
        v_attn = jnp.tanh(attn)

        fj = f_ref[:, pl.ds(j, 1), :]                                 # (Bb,1,D)
        old = out_ref[:, pl.ds(j, 1), :]
        new = jnp.where(cj >= 0, v_attn, jnp.where(cj == -1, fj, old))
        out_ref[:, pl.ds(j, 1), :] = new
        return carry

    lax.fori_loop(1, T, body, 0, unroll=True)

    # ---- new_feature = relu(w_out(f) * v) + f -------------------------------
    fb = f_ref[...]
    v = out_ref[...]
    wo_out = (jnp.dot(fb.reshape(Bb * T, D), wo_ref[...],
                      preferred_element_type=jnp.float32)
              + bo_ref[...]).reshape(Bb, T, D)
    out_ref[...] = jnp.maximum(wo_out * v, 0.0) + fb


def sse_forward(feature, mask_intra, umask, params, *, block_b=None):
    feature = jnp.asarray(feature, jnp.float32)
    mask_intra = jnp.asarray(mask_intra, jnp.float32)
    umask = jnp.asarray(umask, jnp.int32)
    B, T, D = feature.shape
    Bb = block_b if block_b is not None else min(B, 8)
    nb = pl.cdiv(B, Bb)
    B_pad = nb * Bb

    # ---- O(B*T) metadata precomputed with vectorized XLA (no (B,T,T) mask
    #      goes into the kernel) ---------------------------------------------
    t_ids = jnp.arange(T, dtype=jnp.int32)
    u = (umask != 0).astype(jnp.int32).at[:, 0].set(1)
    active = jnp.cumprod(u, axis=1) > 0                                # (B, T)
    valid = jnp.logical_and(t_ids[None, None, :] < t_ids[None, :, None],
                            mask_intra > 0.5)
    l_star = jnp.max(jnp.where(valid, t_ids[None, None, :], -1), axis=2)
    code = jnp.where(active, l_star, -2).astype(jnp.int32)[..., None]  # (B,T,1)
    diff0 = jnp.logical_and(t_ids[None, :] >= 1,
                            mask_intra[:, 0, :] != mask_intra[:, 0, 0:1])
    k_star = jnp.min(jnp.where(diff0, t_ids[None, :], T), axis=1)
    k_star = k_star.astype(jnp.int32).reshape(B, 1, 1)

    if B_pad != B:
        pb = B_pad - B
        feature = jnp.pad(feature, ((0, pb), (0, 0), (0, 0)))
        code = jnp.pad(code, ((0, pb), (0, 0), (0, 0)), constant_values=-2)
        k_star = jnp.pad(k_star, ((0, pb), (0, 0), (0, 0)), constant_values=T)

    Wi_t = jnp.asarray(params["Wi"], jnp.float32).T
    bi = jnp.asarray(params["bi"], jnp.float32).reshape(1, D)
    Wq_t = jnp.asarray(params["Wq"], jnp.float32).T
    bq = jnp.asarray(params["bq"], jnp.float32).reshape(1, D)
    Ww_r = jnp.asarray(params["Ww"], jnp.float32).reshape(1, D)
    # params["bw"] (scalar bias of W) cancels inside the softmax -> not passed.
    Wo_t = jnp.asarray(params["Wo"], jnp.float32).T
    bo = jnp.asarray(params["bo"], jnp.float32).reshape(1, D)

    grid_spec = pltpu.PrefetchScalarGridSpec(
        num_scalar_prefetch=0,
        grid=(nb,),
        in_specs=[
            pl.BlockSpec((Bb, T, 1), lambda i: (i, 0, 0)),    # code metadata
            pl.BlockSpec((Bb, 1, 1), lambda i: (i, 0, 0)),    # k_star
            pl.BlockSpec((Bb, T, D), lambda i: (i, 0, 0)),    # feature block
            pl.BlockSpec((D, D), lambda i: (0, 0)),           # Wi^T
            pl.BlockSpec((1, D), lambda i: (0, 0)),           # bi
            pl.BlockSpec((D, D), lambda i: (0, 0)),           # Wq^T
            pl.BlockSpec((1, D), lambda i: (0, 0)),           # bq
            pl.BlockSpec((1, D), lambda i: (0, 0)),           # Ww
            pl.BlockSpec((D, D), lambda i: (0, 0)),           # Wo^T
            pl.BlockSpec((1, D), lambda i: (0, 0)),           # bo
        ],
        out_specs=pl.BlockSpec((Bb, T, D), lambda i: (i, 0, 0)),
        scratch_shapes=[
            pltpu.VMEM((Bb, T, D), jnp.float32),   # f (post init_trans + relu)
            pltpu.VMEM((Bb, T, D), jnp.float32),   # q * Ww (folded)
        ],
    )
    out = pl.pallas_call(
        sse_kernel,
        out_shape=jax.ShapeDtypeStruct((B_pad, T, D), jnp.float32),
        grid_spec=grid_spec,
        compiler_params=pltpu.CompilerParams(dimension_semantics=("parallel",)),
    )(code, k_star, feature, Wi_t, bi, Wq_t, bq, Ww_r, Wo_t, bo)
    return out[:B]


def init_params(key, D):
    ks = jax.random.split(key, 8)

    def linear(kw, kb, out_f, in_f):
        bound = 1.0 / math.sqrt(in_f)
        W = jax.random.uniform(kw, (out_f, in_f), jnp.float32, -bound, bound)
        b = jax.random.uniform(kb, (out_f,), jnp.float32, -bound, bound)
        return W, b

    Wi, bi = linear(ks[0], ks[1], D, D)
    Wq, bq = linear(ks[2], ks[3], D, D)
    Ww, bw = linear(ks[4], ks[5], 1, D)
    Wo, bo = linear(ks[6], ks[7], D, D)
    return dict(Wi=Wi, bi=bi, Wq=Wq, bq=bq, Ww=Ww, bw=bw, Wo=Wo, bo=bo)


def sse_reference(feature, mask_intra, umask, params):
    """Plain numpy re-implementation of the PyTorch forward (eval mode)."""
    Wi, bi = np.asarray(params["Wi"]), np.asarray(params["bi"])
    Wq, bq = np.asarray(params["Wq"]), np.asarray(params["bq"])
    Ww, bw = np.asarray(params["Ww"]), np.asarray(params["bw"])
    Wo, bo = np.asarray(params["Wo"]), np.asarray(params["bo"])

    f = np.maximum(feature @ Wi.T + bi, 0.0)
    B, T, D = f.shape
    v = np.zeros_like(f)
    for i in range(B):
        c = f[i].copy()
        for j in range(T):
            if j == 0:
                v[i, 0] = c[0]
                for k in range(1, T):
                    if mask_intra[i, 0, k] != mask_intra[i, 0, 0]:
                        v[i, k] = c[k]
                        break
                continue
            if umask[i, j] == 0:
                break
            mark = 0
            for l in range(j - 1, -1, -1):
                if mask_intra[i, j, l] == 1:
                    mark = 1
                    ki = v[i, l:j, :].copy()
                    q = c[j] @ Wq.T + bq
                    s = (ki * (q * Ww[0])).sum(-1) + bw[0]
                    s = s - s.max()
                    a = np.exp(s)
                    a = a / a.sum()
                    v[i, j] = np.tanh(a @ ki)
                    break
            if mark == 0:
                v[i, j] = c[j]
    return np.maximum((f @ Wo.T + bo) * v, 0.0) + f


if __name__ == "__main__":
    key = jax.random.PRNGKey(0)
    B, T, D = 2, 8, 32
    k_feat, k_spk, k_p = jax.random.split(key, 3)

    feature = jax.random.normal(k_feat, (B, T, D), jnp.float32)
    speakers = jax.random.bernoulli(k_spk, 0.5, (B, T)).astype(jnp.int32)
    mask_intra = (speakers[:, :, None] == speakers[:, None, :]).astype(jnp.float32)
    umask = jnp.ones((B, T), jnp.int32).at[1, 6:].set(0)   # batch 1 ends early

    params = init_params(k_p, D)

    out = sse_forward(feature, mask_intra, umask, params)
    out = jax.block_until_ready(out)

    ref = sse_reference(np.asarray(feature), np.asarray(mask_intra),
                        np.asarray(umask), params)
    np.testing.assert_allclose(np.asarray(out), ref, rtol=2e-3, atol=2e-3)
    print("KERNEL_OK")
</pallas_src>

<mosaic_0001>
module attributes {stable_mosaic.version = 11 : i64} {
  func.func @sse_kernel(%arg0: i32, %arg1: memref<2x8x1xi32, #tpu.memory_space<vmem>>, %arg2: memref<2x1x1xi32, #tpu.memory_space<vmem>>, %arg3: memref<2x8x32xf32, #tpu.memory_space<vmem>>, %arg4: memref<32x32xf32, #tpu.memory_space<vmem>>, %arg5: memref<1x32xf32, #tpu.memory_space<vmem>>, %arg6: memref<32x32xf32, #tpu.memory_space<vmem>>, %arg7: memref<1x32xf32, #tpu.memory_space<vmem>>, %arg8: memref<1x32xf32, #tpu.memory_space<vmem>>, %arg9: memref<32x32xf32, #tpu.memory_space<vmem>>, %arg10: memref<1x32xf32, #tpu.memory_space<vmem>>, %arg11: memref<2x8x32xf32, #tpu.memory_space<vmem>>, %arg12: memref<2x8x32xf32, #tpu.memory_space<vmem>>, %arg13: memref<2x8x32xf32, #tpu.memory_space<vmem>>) attributes {dimension_semantics = [#tpu.dimension_semantics<parallel>], iteration_bounds = array<i64: 1>, scalar_prefetch = 0 : i64, scratch_operands = 2 : i64, tpu.core_type = #tpu.core_type<tc>, window_params = [{transform_indices = @transform_0, window_bounds = array<i64: 2, 8, 1>}, {transform_indices = @transform_1, window_bounds = array<i64: 2, 1, 1>}, {transform_indices = @transform_2, window_bounds = array<i64: 2, 8, 32>}, {pipeline_mode = #tpu.pipeline_mode<synchronous>, transform_indices = @transform_3, window_bounds = array<i64: 32, 32>}, {pipeline_mode = #tpu.pipeline_mode<synchronous>, transform_indices = @transform_4, window_bounds = array<i64: 1, 32>}, {pipeline_mode = #tpu.pipeline_mode<synchronous>, transform_indices = @transform_5, window_bounds = array<i64: 32, 32>}, {pipeline_mode = #tpu.pipeline_mode<synchronous>, transform_indices = @transform_6, window_bounds = array<i64: 1, 32>}, {pipeline_mode = #tpu.pipeline_mode<synchronous>, transform_indices = @transform_7, window_bounds = array<i64: 1, 32>}, {pipeline_mode = #tpu.pipeline_mode<synchronous>, transform_indices = @transform_8, window_bounds = array<i64: 32, 32>}, {pipeline_mode = #tpu.pipeline_mode<synchronous>, transform_indices = @transform_9, window_bounds = array<i64: 1, 32>}, {transform_indices = @transform_10, window_bounds = array<i64: 2, 8, 32>}]} {
    %c0 = arith.constant 0 : index
    %c0_0 = arith.constant 0 : index
    %c0_1 = arith.constant 0 : index
    %0 = vector.load %arg3[%c0, %c0_0, %c0_1] : memref<2x8x32xf32, #tpu.memory_space<vmem>>, vector<2x8x32xf32>
    %1 = vector.shape_cast %0 : vector<2x8x32xf32> to vector<16x32xf32>
    %c0_2 = arith.constant 0 : index
    %c0_3 = arith.constant 0 : index
    %2 = vector.load %arg4[%c0_2, %c0_3] : memref<32x32xf32, #tpu.memory_space<vmem>>, vector<32x32xf32>
    %cst = arith.constant dense<0.000000e+00> : vector<16x32xf32>
    %3 = tpu.matmul %1, %2, %cst {dimension_numbers = #tpu.dot_dimension_numbers<[1], [0], [0], [1], [0, 0, 1, 1], [], []>} : vector<16x32xf32>, vector<32x32xf32>, vector<16x32xf32> -> vector<16x32xf32>
    %c0_4 = arith.constant 0 : index
    %c0_5 = arith.constant 0 : index
    %4 = vector.load %arg5[%c0_4, %c0_5] : memref<1x32xf32, #tpu.memory_space<vmem>>, vector<1x32xf32>
    %5 = vector.broadcast %4 : vector<1x32xf32> to vector<16x32xf32>
    %6 = arith.addf %3, %5 : vector<16x32xf32>
    %cst_6 = arith.constant 0.000000e+00 : f32
    %7 = vector.broadcast %cst_6 : f32 to vector<16x32xf32>
    %8 = arith.maximumf %6, %7 : vector<16x32xf32>
    %9 = vector.shape_cast %8 : vector<16x32xf32> to vector<2x8x32xf32>
    %c0_7 = arith.constant 0 : index
    %c0_8 = arith.constant 0 : index
    %c0_9 = arith.constant 0 : index
    %10 = vector.load %arg12[%c0_7, %c0_8, %c0_9] : memref<2x8x32xf32, #tpu.memory_space<vmem>>, vector<2x8x32xf32>
    tpu.vector_store %arg12[%c0_7, %c0_8, %c0_9], %9 {strides = array<i32>} : memref<2x8x32xf32, #tpu.memory_space<vmem>>, vector<2x8x32xf32>,
    %c0_10 = arith.constant 0 : index
    %c0_11 = arith.constant 0 : index
    %11 = vector.load %arg6[%c0_10, %c0_11] : memref<32x32xf32, #tpu.memory_space<vmem>>, vector<32x32xf32>
    %cst_12 = arith.constant dense<0.000000e+00> : vector<16x32xf32>
    %12 = tpu.matmul %8, %11, %cst_12 {dimension_numbers = #tpu.dot_dimension_numbers<[1], [0], [0], [1], [0, 0, 1, 1], [], []>} : vector<16x32xf32>, vector<32x32xf32>, vector<16x32xf32> -> vector<16x32xf32>
    %c0_13 = arith.constant 0 : index
    %c0_14 = arith.constant 0 : index
    %13 = vector.load %arg7[%c0_13, %c0_14] : memref<1x32xf32, #tpu.memory_space<vmem>>, vector<1x32xf32>
    %14 = vector.broadcast %13 : vector<1x32xf32> to vector<16x32xf32>
    %15 = arith.addf %12, %14 : vector<16x32xf32>
    %c0_15 = arith.constant 0 : index
    %c0_16 = arith.constant 0 : index
    %16 = vector.load %arg8[%c0_15, %c0_16] : memref<1x32xf32, #tpu.memory_space<vmem>>, vector<1x32xf32>
    %17 = vector.broadcast %16 : vector<1x32xf32> to vector<16x32xf32>
    %18 = arith.mulf %15, %17 : vector<16x32xf32>
    %19 = vector.shape_cast %18 : vector<16x32xf32> to vector<2x8x32xf32>
    %c0_17 = arith.constant 0 : index
    %c0_18 = arith.constant 0 : index
    %c0_19 = arith.constant 0 : index
    %20 = vector.load %arg13[%c0_17, %c0_18, %c0_19] : memref<2x8x32xf32, #tpu.memory_space<vmem>>, vector<2x8x32xf32>
    tpu.vector_store %arg13[%c0_17, %c0_18, %c0_19], %19 {strides = array<i32>} : memref<2x8x32xf32, #tpu.memory_space<vmem>>, vector<2x8x32xf32>,
    %21 = tpu.iota {dimensions = array<i32: 1>} : vector<1x8x1xi32>
    %c0_i32 = arith.constant 0 : i32
    %22 = vector.broadcast %c0_i32 : i32 to vector<1x8x1xi32>
    %23 = arith.cmpi eq, %21, %22 : vector<1x8x1xi32>
    %c0_20 = arith.constant 0 : index
    %c0_21 = arith.constant 0 : index
    %c0_22 = arith.constant 0 : index
    %24 = vector.load %arg2[%c0_20, %c0_21, %c0_22] : memref<2x1x1xi32, #tpu.memory_space<vmem>>, vector<2x1x1xi32>
    %25 = vector.broadcast %21 : vector<1x8x1xi32> to vector<2x8x1xi32>
    %26 = vector.broadcast %24 : vector<2x1x1xi32> to vector<2x8x1xi32>
    %27 = arith.cmpi eq, %25, %26 : vector<2x8x1xi32>
    %28 = vector.broadcast %23 : vector<1x8x1xi1> to vector<2x8x1xi1>
    %29 = arith.ori %28, %27 : vector<2x8x1xi1>
    %30 = arith.extui %29 : vector<2x8x1xi1> to vector<2x8x1xi32>
    %31 = arith.sitofp %30 : vector<2x8x1xi32> to vector<2x8x1xf32>
    %32 = vector.broadcast %31 : vector<2x8x1xf32> to vector<2x8x32xf32>
    %33 = arith.mulf %9, %32 : vector<2x8x32xf32>
    %c0_23 = arith.constant 0 : index
    %c0_24 = arith.constant 0 : index
    %c0_25 = arith.constant 0 : index
    %34 = vector.load %arg11[%c0_23, %c0_24, %c0_25] : memref<2x8x32xf32, #tpu.memory_space<vmem>>, vector<2x8x32xf32>
    tpu.vector_store %arg11[%c0_23, %c0_24, %c0_25], %33 {strides = array<i32>} : memref<2x8x32xf32, #tpu.memory_space<vmem>>, vector<2x8x32xf32>,
    %c1_i32 = arith.constant 1 : i32
    %c0_26 = arith.constant 0 : index
    %35 = arith.index_cast %c1_i32 : i32 to index
    %c0_27 = arith.constant 0 : index
    %36 = vector.load %arg1[%c0_26, %35, %c0_27] : memref<2x8x1xi32, #tpu.memory_space<vmem>>, vector<2x1x1xi32>
    %c0_28 = arith.constant 0 : index
    %37 = arith.index_cast %c1_i32 : i32 to index
    %c0_29 = arith.constant 0 : index
    %38 = vector.load %arg13[%c0_28, %37, %c0_29] : memref<2x8x32xf32, #tpu.memory_space<vmem>>, vector<2x1x32xf32>
    %c0_30 = arith.constant 0 : index
    %c0_31 = arith.constant 0 : index
    %c0_32 = arith.constant 0 : index
    %39 = vector.load %arg11[%c0_30, %c0_31, %c0_32] : memref<2x8x32xf32, #tpu.memory_space<vmem>>, vector<2x8x32xf32>
    "tpu.trace_start"() <{level = 10 : i32, message = "btd,bqd->btq"}> : () -> ()
    %cst_33 = arith.constant dense<0.000000e+00> : vector<2x8x1xf32>
    %40 = tpu.matmul %39, %38, %cst_33 {dimension_numbers = #tpu.dot_dimension_numbers<[2], [2], [1], [1], [0, 0, 0, 1, 1, 1], [0], [0]>} : vector<2x8x32xf32>, vector<2x1x32xf32>, vector<2x8x1xf32> -> vector<2x8x1xf32>
    "tpu.trace_stop"() : () -> ()
    %41 = vector.broadcast %21 : vector<1x8x1xi32> to vector<2x8x1xi32>
    %42 = vector.broadcast %36 : vector<2x1x1xi32> to vector<2x8x1xi32>
    %43 = arith.cmpi sge, %41, %42 : vector<2x8x1xi32>
    %44 = vector.broadcast %c1_i32 : i32 to vector<1x8x1xi32>
    %45 = arith.cmpi slt, %21, %44 : vector<1x8x1xi32>
    %46 = vector.broadcast %45 : vector<1x8x1xi1> to vector<2x8x1xi1>
    %47 = arith.andi %43, %46 : vector<2x8x1xi1>
    %cst_34 = arith.constant -1.000000e+30 : f32
    %48 = vector.broadcast %cst_34 : f32 to vector<2x8x1xf32>
    %49 = arith.select %47, %40, %48 : vector<2x8x1xi1>, vector<2x8x1xf32>
    %cst_35 = arith.constant dense<0xFF800000> : vector<2x1xf32>
    %50 = vector.multi_reduction <maximumf>, %49, %cst_35 [1] : vector<2x8x1xf32> to vector<2x1xf32>
    %51 = vector.shape_cast %50 : vector<2x1xf32> to vector<2x1x1xf32>
    %52 = vector.broadcast %51 : vector<2x1x1xf32> to vector<2x8x1xf32>
    %53 = arith.subf %49, %52 : vector<2x8x1xf32>
    %54 = math.exp %53 : vector<2x8x1xf32>
    %cst_36 = arith.constant 0.000000e+00 : f32
    %55 = vector.broadcast %cst_36 : f32 to vector<2x8x1xf32>
    %56 = arith.select %47, %54, %55 : vector<2x8x1xi1>, vector<2x8x1xf32>
    %cst_37 = arith.constant dense<0.000000e+00> : vector<2x1xf32>
    %57 = vector.multi_reduction <add>, %56, %cst_37 [1] : vector<2x8x1xf32> to vector<2x1xf32>
    %58 = vector.shape_cast %57 : vector<2x1xf32> to vector<2x1x1xf32>
    %59 = vector.broadcast %58 : vector<2x1x1xf32> to vector<2x8x1xf32>
    %60 = arith.divf %56, %59 : vector<2x8x1xf32>
    "tpu.trace_start"() <{level = 10 : i32, message = "btq,btd->bqd"}> : () -> ()
    %cst_38 = arith.constant dense<0.000000e+00> : vector<2x1x32xf32>
    %61 = tpu.matmul %60, %39, %cst_38 {dimension_numbers = #tpu.dot_dimension_numbers<[1], [1], [2], [2], [0, 0, 0, 2, 1, 2], [0], [0]>} : vector<2x8x1xf32>, vector<2x8x32xf32>, vector<2x1x32xf32> -> vector<2x1x32xf32>
    "tpu.trace_stop"() : () -> ()
    %62 = math.tanh %61 : vector<2x1x32xf32>
    %c0_39 = arith.constant 0 : index
    %63 = arith.index_cast %c1_i32 : i32 to index
    %c0_40 = arith.constant 0 : index
    %64 = vector.load %arg12[%c0_39, %63, %c0_40] : memref<2x8x32xf32, #tpu.memory_space<vmem>>, vector<2x1x32xf32>
    %c0_41 = arith.constant 0 : index
    %65 = arith.index_cast %c1_i32 : i32 to index
    %c0_42 = arith.constant 0 : index
    %66 = vector.load %arg11[%c0_41, %65, %c0_42] : memref<2x8x32xf32, #tpu.memory_space<vmem>>, vector<2x1x32xf32>
    %c0_i32_43 = arith.constant 0 : i32
    %67 = vector.broadcast %c0_i32_43 : i32 to vector<2x1x1xi32>
    %68 = arith.cmpi sge, %36, %67 : vector<2x1x1xi32>
    %c-1_i32 = arith.constant -1 : i32
    %69 = vector.broadcast %c-1_i32 : i32 to vector<2x1x1xi32>
    %70 = arith.cmpi eq, %36, %69 : vector<2x1x1xi32>
    %71 = vector.shape_cast %70 : vector<2x1x1xi1> to vector<2x1x1xi1>
    %72 = vector.broadcast %71 : vector<2x1x1xi1> to vector<2x1x32xi1>
    %73 = arith.select %72, %64, %66 : vector<2x1x32xi1>, vector<2x1x32xf32>
    %74 = vector.shape_cast %68 : vector<2x1x1xi1> to vector<2x1x1xi1>
    %75 = vector.broadcast %74 : vector<2x1x1xi1> to vector<2x1x32xi1>
    %76 = arith.select %75, %62, %73 : vector<2x1x32xi1>, vector<2x1x32xf32>
    %c0_44 = arith.constant 0 : index
    %77 = arith.index_cast %c1_i32 : i32 to index
    %c0_45 = arith.constant 0 : index
    %78 = vector.load %arg11[%c0_44, %77, %c0_45] : memref<2x8x32xf32, #tpu.memory_space<vmem>>, vector<2x1x32xf32>
    tpu.vector_store %arg11[%c0_44, %77, %c0_45], %76 {strides = array<i32>} : memref<2x8x32xf32, #tpu.memory_space<vmem>>, vector<2x1x32xf32>,
    %c2_i32 = arith.constant 2 : i32
    %c0_46 = arith.constant 0 : index
    %79 = arith.index_cast %c2_i32 : i32 to index
    %c0_47 = arith.constant 0 : index
    %80 = vector.load %arg1[%c0_46, %79, %c0_47] : memref<2x8x1xi32, #tpu.memory_space<vmem>>, vector<2x1x1xi32>
    %c0_48 = arith.constant 0 : index
    %81 = arith.index_cast %c2_i32 : i32 to index
    %c0_49 = arith.constant 0 : index
    %82 = vector.load %arg13[%c0_48, %81, %c0_49] : memref<2x8x32xf32, #tpu.memory_space<vmem>>, vector<2x1x32xf32>
    %c0_50 = arith.constant 0 : index
    %c0_51 = arith.constant 0 : index
    %c0_52 = arith.constant 0 : index
    %83 = vector.load %arg11[%c0_50, %c0_51, %c0_52] : memref<2x8x32xf32, #tpu.memory_space<vmem>>, vector<2x8x32xf32>
    "tpu.trace_start"() <{level = 10 : i32, message = "btd,bqd->btq"}> : () -> ()
    %cst_53 = arith.constant dense<0.000000e+00> : vector<2x8x1xf32>
    %84 = tpu.matmul %83, %82, %cst_53 {dimension_numbers = #tpu.dot_dimension_numbers<[2], [2], [1], [1], [0, 0, 0, 1, 1, 1], [0], [0]>} : vector<2x8x32xf32>, vector<2x1x32xf32>, vector<2x8x1xf32> -> vector<2x8x1xf32>
    "tpu.trace_stop"() : () -> ()
    %85 = vector.broadcast %21 : vector<1x8x1xi32> to vector<2x8x1xi32>
    %86 = vector.broadcast %80 : vector<2x1x1xi32> to vector<2x8x1xi32>
    %87 = arith.cmpi sge, %85, %86 : vector<2x8x1xi32>
    %88 = vector.broadcast %c2_i32 : i32 to vector<1x8x1xi32>
    %89 = arith.cmpi slt, %21, %88 : vector<1x8x1xi32>
    %90 = vector.broadcast %89 : vector<1x8x1xi1> to vector<2x8x1xi1>
    %91 = arith.andi %87, %90 : vector<2x8x1xi1>
    %cst_54 = arith.constant -1.000000e+30 : f32
    %92 = vector.broadcast %cst_54 : f32 to vector<2x8x1xf32>
    %93 = arith.select %91, %84, %92 : vector<2x8x1xi1>, vector<2x8x1xf32>
    %cst_55 = arith.constant dense<0xFF800000> : vector<2x1xf32>
    %94 = vector.multi_reduction <maximumf>, %93, %cst_55 [1] : vector<2x8x1xf32> to vector<2x1xf32>
    %95 = vector.shape_cast %94 : vector<2x1xf32> to vector<2x1x1xf32>
    %96 = vector.broadcast %95 : vector<2x1x1xf32> to vector<2x8x1xf32>
    %97 = arith.subf %93, %96 : vector<2x8x1xf32>
    %98 = math.exp %97 : vector<2x8x1xf32>
    %cst_56 = arith.constant 0.000000e+00 : f32
    %99 = vector.broadcast %cst_56 : f32 to vector<2x8x1xf32>
    %100 = arith.select %91, %98, %99 : vector<2x8x1xi1>, vector<2x8x1xf32>
    %cst_57 = arith.constant dense<0.000000e+00> : vector<2x1xf32>
    %101 = vector.multi_reduction <add>, %100, %cst_57 [1] : vector<2x8x1xf32> to vector<2x1xf32>
    %102 = vector.shape_cast %101 : vector<2x1xf32> to vector<2x1x1xf32>
    %103 = vector.broadcast %102 : vector<2x1x1xf32> to vector<2x8x1xf32>
    %104 = arith.divf %100, %103 : vector<2x8x1xf32>
    "tpu.trace_start"() <{level = 10 : i32, message = "btq,btd->bqd"}> : () -> ()
    %cst_58 = arith.constant dense<0.000000e+00> : vector<2x1x32xf32>
    %105 = tpu.matmul %104, %83, %cst_58 {dimension_numbers = #tpu.dot_dimension_numbers<[1], [1], [2], [2], [0, 0, 0, 2, 1, 2], [0], [0]>} : vector<2x8x1xf32>, vector<2x8x32xf32>, vector<2x1x32xf32> -> vector<2x1x32xf32>
    "tpu.trace_stop"() : () -> ()
    %106 = math.tanh %105 : vector<2x1x32xf32>
    %c0_59 = arith.constant 0 : index
    %107 = arith.index_cast %c2_i32 : i32 to index
    %c0_60 = arith.constant 0 : index
    %108 = vector.load %arg12[%c0_59, %107, %c0_60] : memref<2x8x32xf32, #tpu.memory_space<vmem>>, vector<2x1x32xf32>
    %c0_61 = arith.constant 0 : index
    %109 = arith.index_cast %c2_i32 : i32 to index
    %c0_62 = arith.constant 0 : index
    %110 = vector.load %arg11[%c0_61, %109, %c0_62] : memref<2x8x32xf32, #tpu.memory_space<vmem>>, vector<2x1x32xf32>
    %c0_i32_63 = arith.constant 0 : i32
    %111 = vector.broadcast %c0_i32_63 : i32 to vector<2x1x1xi32>
    %112 = arith.cmpi sge, %80, %111 : vector<2x1x1xi32>
    %c-1_i32_64 = arith.constant -1 : i32
    %113 = vector.broadcast %c-1_i32_64 : i32 to vector<2x1x1xi32>
    %114 = arith.cmpi eq, %80, %113 : vector<2x1x1xi32>
    %115 = vector.shape_cast %114 : vector<2x1x1xi1> to vector<2x1x1xi1>
    %116 = vector.broadcast %115 : vector<2x1x1xi1> to vector<2x1x32xi1>
    %117 = arith.select %116, %108, %110 : vector<2x1x32xi1>, vector<2x1x32xf32>
    %118 = vector.shape_cast %112 : vector<2x1x1xi1> to vector<2x1x1xi1>
    %119 = vector.broadcast %118 : vector<2x1x1xi1> to vector<2x1x32xi1>
    %120 = arith.select %119, %106, %117 : vector<2x1x32xi1>, vector<2x1x32xf32>
    %c0_65 = arith.constant 0 : index
    %121 = arith.index_cast %c2_i32 : i32 to index
    %c0_66 = arith.constant 0 : index
    %122 = vector.load %arg11[%c0_65, %121, %c0_66] : memref<2x8x32xf32, #tpu.memory_space<vmem>>, vector<2x1x32xf32>
    tpu.vector_store %arg11[%c0_65, %121, %c0_66], %120 {strides = array<i32>} : memref<2x8x32xf32, #tpu.memory_space<vmem>>, vector<2x1x32xf32>,
    %c3_i32 = arith.constant 3 : i32
    %c0_67 = arith.constant 0 : index
    %123 = arith.index_cast %c3_i32 : i32 to index
    %c0_68 = arith.constant 0 : index
    %124 = vector.load %arg1[%c0_67, %123, %c0_68] : memref<2x8x1xi32, #tpu.memory_space<vmem>>, vector<2x1x1xi32>
    %c0_69 = arith.constant 0 : index
    %125 = arith.index_cast %c3_i32 : i32 to index
    %c0_70 = arith.constant 0 : index
    %126 = vector.load %arg13[%c0_69, %125, %c0_70] : memref<2x8x32xf32, #tpu.memory_space<vmem>>, vector<2x1x32xf32>
    %c0_71 = arith.constant 0 : index
    %c0_72 = arith.constant 0 : index
    %c0_73 = arith.constant 0 : index
    %127 = vector.load %arg11[%c0_71, %c0_72, %c0_73] : memref<2x8x32xf32, #tpu.memory_space<vmem>>, vector<2x8x32xf32>
    "tpu.trace_start"() <{level = 10 : i32, message = "btd,bqd->btq"}> : () -> ()
    %cst_74 = arith.constant dense<0.000000e+00> : vector<2x8x1xf32>
    %128 = tpu.matmul %127, %126, %cst_74 {dimension_numbers = #tpu.dot_dimension_numbers<[2], [2], [1], [1], [0, 0, 0, 1, 1, 1], [0], [0]>} : vector<2x8x32xf32>, vector<2x1x32xf32>, vector<2x8x1xf32> -> vector<2x8x1xf32>
    "tpu.trace_stop"() : () -> ()
    %129 = vector.broadcast %21 : vector<1x8x1xi32> to vector<2x8x1xi32>
    %130 = vector.broadcast %124 : vector<2x1x1xi32> to vector<2x8x1xi32>
    %131 = arith.cmpi sge, %129, %130 : vector<2x8x1xi32>
    %132 = vector.broadcast %c3_i32 : i32 to vector<1x8x1xi32>
    %133 = arith.cmpi slt, %21, %132 : vector<1x8x1xi32>
    %134 = vector.broadcast %133 : vector<1x8x1xi1> to vector<2x8x1xi1>
    %135 = arith.andi %131, %134 : vector<2x8x1xi1>
    %cst_75 = arith.constant -1.000000e+30 : f32
    %136 = vector.broadcast %cst_75 : f32 to vector<2x8x1xf32>
    %137 = arith.select %135, %128, %136 : vector<2x8x1xi1>, vector<2x8x1xf32>
    %cst_76 = arith.constant dense<0xFF800000> : vector<2x1xf32>
    %138 = vector.multi_reduction <maximumf>, %137, %cst_76 [1] : vector<2x8x1xf32> to vector<2x1xf32>
    %139 = vector.shape_cast %138 : vector<2x1xf32> to vector<2x1x1xf32>
    %140 = vector.broadcast %139 : vector<2x1x1xf32> to vector<2x8x1xf32>
    %141 = arith.subf %137, %140 : vector<2x8x1xf32>
    %142 = math.exp %141 : vector<2x8x1xf32>
    %cst_77 = arith.constant 0.000000e+00 : f32
    %143 = vector.broadcast %cst_77 : f32 to vector<2x8x1xf32>
    %144 = arith.select %135, %142, %143 : vector<2x8x1xi1>, vector<2x8x1xf32>
    %cst_78 = arith.constant dense<0.000000e+00> : vector<2x1xf32>
    %145 = vector.multi_reduction <add>, %144, %cst_78 [1] : vector<2x8x1xf32> to vector<2x1xf32>
    %146 = vector.shape_cast %145 : vector<2x1xf32> to vector<2x1x1xf32>
    %147 = vector.broadcast %146 : vector<2x1x1xf32> to vector<2x8x1xf32>
    %148 = arith.divf %144, %147 : vector<2x8x1xf32>
    "tpu.trace_start"() <{level = 10 : i32, message = "btq,btd->bqd"}> : () -> ()
    %cst_79 = arith.constant dense<0.000000e+00> : vector<2x1x32xf32>
    %149 = tpu.matmul %148, %127, %cst_79 {dimension_numbers = #tpu.dot_dimension_numbers<[1], [1], [2], [2], [0, 0, 0, 2, 1, 2], [0], [0]>} : vector<2x8x1xf32>, vector<2x8x32xf32>, vector<2x1x32xf32> -> vector<2x1x32xf32>
    "tpu.trace_stop"() : () -> ()
    %150 = math.tanh %149 : vector<2x1x32xf32>
    %c0_80 = arith.constant 0 : index
    %151 = arith.index_cast %c3_i32 : i32 to index
    %c0_81 = arith.constant 0 : index
    %152 = vector.load %arg12[%c0_80, %151, %c0_81] : memref<2x8x32xf32, #tpu.memory_space<vmem>>, vector<2x1x32xf32>
    %c0_82 = arith.constant 0 : index
    %153 = arith.index_cast %c3_i32 : i32 to index
    %c0_83 = arith.constant 0 : index
    %154 = vector.load %arg11[%c0_82, %153, %c0_83] : memref<2x8x32xf32, #tpu.memory_space<vmem>>, vector<2x1x32xf32>
    %c0_i32_84 = arith.constant 0 : i32
    %155 = vector.broadcast %c0_i32_84 : i32 to vector<2x1x1xi32>
    %156 = arith.cmpi sge, %124, %155 : vector<2x1x1xi32>
    %c-1_i32_85 = arith.constant -1 : i32
    %157 = vector.broadcast %c-1_i32_85 : i32 to vector<2x1x1xi32>
    %158 = arith.cmpi eq, %124, %157 : vector<2x1x1xi32>
    %159 = vector.shape_cast %158 : vector<2x1x1xi1> to vector<2x1x1xi1>
    %160 = vector.broadcast %159 : vector<2x1x1xi1> to vector<2x1x32xi1>
    %161 = arith.select %160, %152, %154 : vector<2x1x32xi1>, vector<2x1x32xf32>
    %162 = vector.shape_cast %156 : vector<2x1x1xi1> to vector<2x1x1xi1>
    %163 = vector.broadcast %162 : vector<2x1x1xi1> to vector<2x1x32xi1>
    %164 = arith.select %163, %150, %161 : vector<2x1x32xi1>, vector<2x1x32xf32>
    %c0_86 = arith.constant 0 : index
    %165 = arith.index_cast %c3_i32 : i32 to index
    %c0_87 = arith.constant 0 : index
    %166 = vector.load %arg11[%c0_86, %165, %c0_87] : memref<2x8x32xf32, #tpu.memory_space<vmem>>, vector<2x1x32xf32>
    tpu.vector_store %arg11[%c0_86, %165, %c0_87], %164 {strides = array<i32>} : memref<2x8x32xf32, #tpu.memory_space<vmem>>, vector<2x1x32xf32>,
    %c4_i32 = arith.constant 4 : i32
    %c0_88 = arith.constant 0 : index
    %167 = arith.index_cast %c4_i32 : i32 to index
    %c0_89 = arith.constant 0 : index
    %168 = vector.load %arg1[%c0_88, %167, %c0_89] : memref<2x8x1xi32, #tpu.memory_space<vmem>>, vector<2x1x1xi32>
    %c0_90 = arith.constant 0 : index
    %169 = arith.index_cast %c4_i32 : i32 to index
    %c0_91 = arith.constant 0 : index
    %170 = vector.load %arg13[%c0_90, %169, %c0_91] : memref<2x8x32xf32, #tpu.memory_space<vmem>>, vector<2x1x32xf32>
    %c0_92 = arith.constant 0 : index
    %c0_93 = arith.constant 0 : index
    %c0_94 = arith.constant 0 : index
    %171 = vector.load %arg11[%c0_92, %c0_93, %c0_94] : memref<2x8x32xf32, #tpu.memory_space<vmem>>, vector<2x8x32xf32>
    "tpu.trace_start"() <{level = 10 : i32, message = "btd,bqd->btq"}> : () -> ()
    %cst_95 = arith.constant dense<0.000000e+00> : vector<2x8x1xf32>
    %172 = tpu.matmul %171, %170, %cst_95 {dimension_numbers = #tpu.dot_dimension_numbers<[2], [2], [1], [1], [0, 0, 0, 1, 1, 1], [0], [0]>} : vector<2x8x32xf32>, vector<2x1x32xf32>, vector<2x8x1xf32> -> vector<2x8x1xf32>
    "tpu.trace_stop"() : () -> ()
    %173 = vector.broadcast %21 : vector<1x8x1xi32> to vector<2x8x1xi32>
    %174 = vector.broadcast %168 : vector<2x1x1xi32> to vector<2x8x1xi32>
    %175 = arith.cmpi sge, %173, %174 : vector<2x8x1xi32>
    %176 = vector.broadcast %c4_i32 : i32 to vector<1x8x1xi32>
    %177 = arith.cmpi slt, %21, %176 : vector<1x8x1xi32>
    %178 = vector.broadcast %177 : vector<1x8x1xi1> to vector<2x8x1xi1>
    %179 = arith.andi %175, %178 : vector<2x8x1xi1>
    %cst_96 = arith.constant -1.000000e+30 : f32
    %180 = vector.broadcast %cst_96 : f32 to vector<2x8x1xf32>
    %181 = arith.select %179, %172, %180 : vector<2x8x1xi1>, vector<2x8x1xf32>
    %cst_97 = arith.constant dense<0xFF800000> : vector<2x1xf32>
    %182 = vector.multi_reduction <maximumf>, %181, %cst_97 [1] : vector<2x8x1xf32> to vector<2x1xf32>
    %183 = vector.shape_cast %182 : vector<2x1xf32> to vector<2x1x1xf32>
    %184 = vector.broadcast %183 : vector<2x1x1xf32> to vector<2x8x1xf32>
    %185 = arith.subf %181, %184 : vector<2x8x1xf32>
    %186 = math.exp %185 : vector<2x8x1xf32>
    %cst_98 = arith.constant 0.000000e+00 : f32
    %187 = vector.broadcast %cst_98 : f32 to vector<2x8x1xf32>
    %188 = arith.select %179, %186, %187 : vector<2x8x1xi1>, vector<2x8x1xf32>
    %cst_99 = arith.constant dense<0.000000e+00> : vector<2x1xf32>
    %189 = vector.multi_reduction <add>, %188, %cst_99 [1] : vector<2x8x1xf32> to vector<2x1xf32>
    %190 = vector.shape_cast %189 : vector<2x1xf32> to vector<2x1x1xf32>
    %191 = vector.broadcast %190 : vector<2x1x1xf32> to vector<2x8x1xf32>
    %192 = arith.divf %188, %191 : vector<2x8x1xf32>
    "tpu.trace_start"() <{level = 10 : i32, message = "btq,btd->bqd"}> : () -> ()
    %cst_100 = arith.constant dense<0.000000e+00> : vector<2x1x32xf32>
    %193 = tpu.matmul %192, %171, %cst_100 {dimension_numbers = #tpu.dot_dimension_numbers<[1], [1], [2], [2], [0, 0, 0, 2, 1, 2], [0], [0]>} : vector<2x8x1xf32>, vector<2x8x32xf32>, vector<2x1x32xf32> -> vector<2x1x32xf32>
    "tpu.trace_stop"() : () -> ()
    %194 = math.tanh %193 : vector<2x1x32xf32>
    %c0_101 = arith.constant 0 : index
    %195 = arith.index_cast %c4_i32 : i32 to index
    %c0_102 = arith.constant 0 : index
    %196 = vector.load %arg12[%c0_101, %195, %c0_102] : memref<2x8x32xf32, #tpu.memory_space<vmem>>, vector<2x1x32xf32>
    %c0_103 = arith.constant 0 : index
    %197 = arith.index_cast %c4_i32 : i32 to index
    %c0_104 = arith.constant 0 : index
    %198 = vector.load %arg11[%c0_103, %197, %c0_104] : memref<2x8x32xf32, #tpu.memory_space<vmem>>, vector<2x1x32xf32>
    %c0_i32_105 = arith.constant 0 : i32
    %199 = vector.broadcast %c0_i32_105 : i32 to vector<2x1x1xi32>
    %200 = arith.cmpi sge, %168, %199 : vector<2x1x1xi32>
    %c-1_i32_106 = arith.constant -1 : i32
    %201 = vector.broadcast %c-1_i32_106 : i32 to vector<2x1x1xi32>
    %202 = arith.cmpi eq, %168, %201 : vector<2x1x1xi32>
    %203 = vector.shape_cast %202 : vector<2x1x1xi1> to vector<2x1x1xi1>
    %204 = vector.broadcast %203 : vector<2x1x1xi1> to vector<2x1x32xi1>
    %205 = arith.select %204, %196, %198 : vector<2x1x32xi1>, vector<2x1x32xf32>
    %206 = vector.shape_cast %200 : vector<2x1x1xi1> to vector<2x1x1xi1>
    %207 = vector.broadcast %206 : vector<2x1x1xi1> to vector<2x1x32xi1>
    %208 = arith.select %207, %194, %205 : vector<2x1x32xi1>, vector<2x1x32xf32>
    %c0_107 = arith.constant 0 : index
    %209 = arith.index_cast %c4_i32 : i32 to index
    %c0_108 = arith.constant 0 : index
    %210 = vector.load %arg11[%c0_107, %209, %c0_108] : memref<2x8x32xf32, #tpu.memory_space<vmem>>, vector<2x1x32xf32>
    tpu.vector_store %arg11[%c0_107, %209, %c0_108], %208 {strides = array<i32>} : memref<2x8x32xf32, #tpu.memory_space<vmem>>, vector<2x1x32xf32>,
    %c5_i32 = arith.constant 5 : i32
    %c0_109 = arith.constant 0 : index
    %211 = arith.index_cast %c5_i32 : i32 to index
    %c0_110 = arith.constant 0 : index
    %212 = vector.load %arg1[%c0_109, %211, %c0_110] : memref<2x8x1xi32, #tpu.memory_space<vmem>>, vector<2x1x1xi32>
    %c0_111 = arith.constant 0 : index
    %213 = arith.index_cast %c5_i32 : i32 to index
    %c0_112 = arith.constant 0 : index
    %214 = vector.load %arg13[%c0_111, %213, %c0_112] : memref<2x8x32xf32, #tpu.memory_space<vmem>>, vector<2x1x32xf32>
    %c0_113 = arith.constant 0 : index
    %c0_114 = arith.constant 0 : index
    %c0_115 = arith.constant 0 : index
    %215 = vector.load %arg11[%c0_113, %c0_114, %c0_115] : memref<2x8x32xf32, #tpu.memory_space<vmem>>, vector<2x8x32xf32>
    "tpu.trace_start"() <{level = 10 : i32, message = "btd,bqd->btq"}> : () -> ()
    %cst_116 = arith.constant dense<0.000000e+00> : vector<2x8x1xf32>
    %216 = tpu.matmul %215, %214, %cst_116 {dimension_numbers = #tpu.dot_dimension_numbers<[2], [2], [1], [1], [0, 0, 0, 1, 1, 1], [0], [0]>} : vector<2x8x32xf32>, vector<2x1x32xf32>, vector<2x8x1xf32> -> vector<2x8x1xf32>
    "tpu.trace_stop"() : () -> ()
    %217 = vector.broadcast %21 : vector<1x8x1xi32> to vector<2x8x1xi32>
    %218 = vector.broadcast %212 : vector<2x1x1xi32> to vector<2x8x1xi32>
    %219 = arith.cmpi sge, %217, %218 : vector<2x8x1xi32>
    %220 = vector.broadcast %c5_i32 : i32 to vector<1x8x1xi32>
    %221 = arith.cmpi slt, %21, %220 : vector<1x8x1xi32>
    %222 = vector.broadcast %221 : vector<1x8x1xi1> to vector<2x8x1xi1>
    %223 = arith.andi %219, %222 : vector<2x8x1xi1>
    %cst_117 = arith.constant -1.000000e+30 : f32
    %224 = vector.broadcast %cst_117 : f32 to vector<2x8x1xf32>
    %225 = arith.select %223, %216, %224 : vector<2x8x1xi1>, vector<2x8x1xf32>
    %cst_118 = arith.constant dense<0xFF800000> : vector<2x1xf32>
    %226 = vector.multi_reduction <maximumf>, %225, %cst_118 [1] : vector<2x8x1xf32> to vector<2x1xf32>
    %227 = vector.shape_cast %226 : vector<2x1xf32> to vector<2x1x1xf32>
    %228 = vector.broadcast %227 : vector<2x1x1xf32> to vector<2x8x1xf32>
    %229 = arith.subf %225, %228 : vector<2x8x1xf32>
    %230 = math.exp %229 : vector<2x8x1xf32>
    %cst_119 = arith.constant 0.000000e+00 : f32
    %231 = vector.broadcast %cst_119 : f32 to vector<2x8x1xf32>
    %232 = arith.select %223, %230, %231 : vector<2x8x1xi1>, vector<2x8x1xf32>
    %cst_120 = arith.constant dense<0.000000e+00> : vector<2x1xf32>
    %233 = vector.multi_reduction <add>, %232, %cst_120 [1] : vector<2x8x1xf32> to vector<2x1xf32>
    %234 = vector.shape_cast %233 : vector<2x1xf32> to vector<2x1x1xf32>
    %235 = vector.broadcast %234 : vector<2x1x1xf32> to vector<2x8x1xf32>
    %236 = arith.divf %232, %235 : vector<2x8x1xf32>
    "tpu.trace_start"() <{level = 10 : i32, message = "btq,btd->bqd"}> : () -> ()
    %cst_121 = arith.constant dense<0.000000e+00> : vector<2x1x32xf32>
    %237 = tpu.matmul %236, %215, %cst_121 {dimension_numbers = #tpu.dot_dimension_numbers<[1], [1], [2], [2], [0, 0, 0, 2, 1, 2], [0], [0]>} : vector<2x8x1xf32>, vector<2x8x32xf32>, vector<2x1x32xf32> -> vector<2x1x32xf32>
    "tpu.trace_stop"() : () -> ()
    %238 = math.tanh %237 : vector<2x1x32xf32>
    %c0_122 = arith.constant 0 : index
    %239 = arith.index_cast %c5_i32 : i32 to index
    %c0_123 = arith.constant 0 : index
    %240 = vector.load %arg12[%c0_122, %239, %c0_123] : memref<2x8x32xf32, #tpu.memory_space<vmem>>, vector<2x1x32xf32>
    %c0_124 = arith.constant 0 : index
    %241 = arith.index_cast %c5_i32 : i32 to index
    %c0_125 = arith.constant 0 : index
    %242 = vector.load %arg11[%c0_124, %241, %c0_125] : memref<2x8x32xf32, #tpu.memory_space<vmem>>, vector<2x1x32xf32>
    %c0_i32_126 = arith.constant 0 : i32
    %243 = vector.broadcast %c0_i32_126 : i32 to vector<2x1x1xi32>
    %244 = arith.cmpi sge, %212, %243 : vector<2x1x1xi32>
    %c-1_i32_127 = arith.constant -1 : i32
    %245 = vector.broadcast %c-1_i32_127 : i32 to vector<2x1x1xi32>
    %246 = arith.cmpi eq, %212, %245 : vector<2x1x1xi32>
    %247 = vector.shape_cast %246 : vector<2x1x1xi1> to vector<2x1x1xi1>
    %248 = vector.broadcast %247 : vector<2x1x1xi1> to vector<2x1x32xi1>
    %249 = arith.select %248, %240, %242 : vector<2x1x32xi1>, vector<2x1x32xf32>
    %250 = vector.shape_cast %244 : vector<2x1x1xi1> to vector<2x1x1xi1>
    %251 = vector.broadcast %250 : vector<2x1x1xi1> to vector<2x1x32xi1>
    %252 = arith.select %251, %238, %249 : vector<2x1x32xi1>, vector<2x1x32xf32>
    %c0_128 = arith.constant 0 : index
    %253 = arith.index_cast %c5_i32 : i32 to index
    %c0_129 = arith.constant 0 : index
    %254 = vector.load %arg11[%c0_128, %253, %c0_129] : memref<2x8x32xf32, #tpu.memory_space<vmem>>, vector<2x1x32xf32>
    tpu.vector_store %arg11[%c0_128, %253, %c0_129], %252 {strides = array<i32>} : memref<2x8x32xf32, #tpu.memory_space<vmem>>, vector<2x1x32xf32>,
    %c6_i32 = arith.constant 6 : i32
    %c0_130 = arith.constant 0 : index
    %255 = arith.index_cast %c6_i32 : i32 to index
    %c0_131 = arith.constant 0 : index
    %256 = vector.load %arg1[%c0_130, %255, %c0_131] : memref<2x8x1xi32, #tpu.memory_space<vmem>>, vector<2x1x1xi32>
    %c0_132 = arith.constant 0 : index
    %257 = arith.index_cast %c6_i32 : i32 to index
    %c0_133 = arith.constant 0 : index
    %258 = vector.load %arg13[%c0_132, %257, %c0_133] : memref<2x8x32xf32, #tpu.memory_space<vmem>>, vector<2x1x32xf32>
    %c0_134 = arith.constant 0 : index
    %c0_135 = arith.constant 0 : index
    %c0_136 = arith.constant 0 : index
    %259 = vector.load %arg11[%c0_134, %c0_135, %c0_136] : memref<2x8x32xf32, #tpu.memory_space<vmem>>, vector<2x8x32xf32>
    "tpu.trace_start"() <{level = 10 : i32, message = "btd,bqd->btq"}> : () -> ()
    %cst_137 = arith.constant dense<0.000000e+00> : vector<2x8x1xf32>
    %260 = tpu.matmul %259, %258, %cst_137 {dimension_numbers = #tpu.dot_dimension_numbers<[2], [2], [1], [1], [0, 0, 0, 1, 1, 1], [0], [0]>} : vector<2x8x32xf32>, vector<2x1x32xf32>, vector<2x8x1xf32> -> vector<2x8x1xf32>
    "tpu.trace_stop"() : () -> ()
    %261 = vector.broadcast %21 : vector<1x8x1xi32> to vector<2x8x1xi32>
    %262 = vector.broadcast %256 : vector<2x1x1xi32> to vector<2x8x1xi32>
    %263 = arith.cmpi sge, %261, %262 : vector<2x8x1xi32>
    %264 = vector.broadcast %c6_i32 : i32 to vector<1x8x1xi32>
    %265 = arith.cmpi slt, %21, %264 : vector<1x8x1xi32>
    %266 = vector.broadcast %265 : vector<1x8x1xi1> to vector<2x8x1xi1>
    %267 = arith.andi %263, %266 : vector<2x8x1xi1>
    %cst_138 = arith.constant -1.000000e+30 : f32
    %268 = vector.broadcast %cst_138 : f32 to vector<2x8x1xf32>
    %269 = arith.select %267, %260, %268 : vector<2x8x1xi1>, vector<2x8x1xf32>
    %cst_139 = arith.constant dense<0xFF800000> : vector<2x1xf32>
    %270 = vector.multi_reduction <maximumf>, %269, %cst_139 [1] : vector<2x8x1xf32> to vector<2x1xf32>
    %271 = vector.shape_cast %270 : vector<2x1xf32> to vector<2x1x1xf32>
    %272 = vector.broadcast %271 : vector<2x1x1xf32> to vector<2x8x1xf32>
    %273 = arith.subf %269, %272 : vector<2x8x1xf32>
    %274 = math.exp %273 : vector<2x8x1xf32>
    %cst_140 = arith.constant 0.000000e+00 : f32
    %275 = vector.broadcast %cst_140 : f32 to vector<2x8x1xf32>
    %276 = arith.select %267, %274, %275 : vector<2x8x1xi1>, vector<2x8x1xf32>
    %cst_141 = arith.constant dense<0.000000e+00> : vector<2x1xf32>
    %277 = vector.multi_reduction <add>, %276, %cst_141 [1] : vector<2x8x1xf32> to vector<2x1xf32>
    %278 = vector.shape_cast %277 : vector<2x1xf32> to vector<2x1x1xf32>
    %279 = vector.broadcast %278 : vector<2x1x1xf32> to vector<2x8x1xf32>
    %280 = arith.divf %276, %279 : vector<2x8x1xf32>
    "tpu.trace_start"() <{level = 10 : i32, message = "btq,btd->bqd"}> : () -> ()
    %cst_142 = arith.constant dense<0.000000e+00> : vector<2x1x32xf32>
    %281 = tpu.matmul %280, %259, %cst_142 {dimension_numbers = #tpu.dot_dimension_numbers<[1], [1], [2], [2], [0, 0, 0, 2, 1, 2], [0], [0]>} : vector<2x8x1xf32>, vector<2x8x32xf32>, vector<2x1x32xf32> -> vector<2x1x32xf32>
    "tpu.trace_stop"() : () -> ()
    %282 = math.tanh %281 : vector<2x1x32xf32>
    %c0_143 = arith.constant 0 : index
    %283 = arith.index_cast %c6_i32 : i32 to index
    %c0_144 = arith.constant 0 : index
    %284 = vector.load %arg12[%c0_143, %283, %c0_144] : memref<2x8x32xf32, #tpu.memory_space<vmem>>, vector<2x1x32xf32>
    %c0_145 = arith.constant 0 : index
    %285 = arith.index_cast %c6_i32 : i32 to index
    %c0_146 = arith.constant 0 : index
    %286 = vector.load %arg11[%c0_145, %285, %c0_146] : memref<2x8x32xf32, #tpu.memory_space<vmem>>, vector<2x1x32xf32>
    %c0_i32_147 = arith.constant 0 : i32
    %287 = vector.broadcast %c0_i32_147 : i32 to vector<2x1x1xi32>
    %288 = arith.cmpi sge, %256, %287 : vector<2x1x1xi32>
    %c-1_i32_148 = arith.constant -1 : i32
    %289 = vector.broadcast %c-1_i32_148 : i32 to vector<2x1x1xi32>
    %290 = arith.cmpi eq, %256, %289 : vector<2x1x1xi32>
    %291 = vector.shape_cast %290 : vector<2x1x1xi1> to vector<2x1x1xi1>
    %292 = vector.broadcast %291 : vector<2x1x1xi1> to vector<2x1x32xi1>
    %293 = arith.select %292, %284, %286 : vector<2x1x32xi1>, vector<2x1x32xf32>
    %294 = vector.shape_cast %288 : vector<2x1x1xi1> to vector<2x1x1xi1>
    %295 = vector.broadcast %294 : vector<2x1x1xi1> to vector<2x1x32xi1>
    %296 = arith.select %295, %282, %293 : vector<2x1x32xi1>, vector<2x1x32xf32>
    %c0_149 = arith.constant 0 : index
    %297 = arith.index_cast %c6_i32 : i32 to index
    %c0_150 = arith.constant 0 : index
    %298 = vector.load %arg11[%c0_149, %297, %c0_150] : memref<2x8x32xf32, #tpu.memory_space<vmem>>, vector<2x1x32xf32>
    tpu.vector_store %arg11[%c0_149, %297, %c0_150], %296 {strides = array<i32>} : memref<2x8x32xf32, #tpu.memory_space<vmem>>, vector<2x1x32xf32>,
    %c7_i32 = arith.constant 7 : i32
    %c0_151 = arith.constant 0 : index
    %299 = arith.index_cast %c7_i32 : i32 to index
    %c0_152 = arith.constant 0 : index
    %300 = vector.load %arg1[%c0_151, %299, %c0_152] : memref<2x8x1xi32, #tpu.memory_space<vmem>>, vector<2x1x1xi32>
    %c0_153 = arith.constant 0 : index
    %301 = arith.index_cast %c7_i32 : i32 to index
    %c0_154 = arith.constant 0 : index
    %302 = vector.load %arg13[%c0_153, %301, %c0_154] : memref<2x8x32xf32, #tpu.memory_space<vmem>>, vector<2x1x32xf32>
    %c0_155 = arith.constant 0 : index
    %c0_156 = arith.constant 0 : index
    %c0_157 = arith.constant 0 : index
    %303 = vector.load %arg11[%c0_155, %c0_156, %c0_157] : memref<2x8x32xf32, #tpu.memory_space<vmem>>, vector<2x8x32xf32>
    "tpu.trace_start"() <{level = 10 : i32, message = "btd,bqd->btq"}> : () -> ()
    %cst_158 = arith.constant dense<0.000000e+00> : vector<2x8x1xf32>
    %304 = tpu.matmul %303, %302, %cst_158 {dimension_numbers = #tpu.dot_dimension_numbers<[2], [2], [1], [1], [0, 0, 0, 1, 1, 1], [0], [0]>} : vector<2x8x32xf32>, vector<2x1x32xf32>, vector<2x8x1xf32> -> vector<2x8x1xf32>
    "tpu.trace_stop"() : () -> ()
    %305 = vector.broadcast %21 : vector<1x8x1xi32> to vector<2x8x1xi32>
    %306 = vector.broadcast %300 : vector<2x1x1xi32> to vector<2x8x1xi32>
    %307 = arith.cmpi sge, %305, %306 : vector<2x8x1xi32>
    %308 = vector.broadcast %c7_i32 : i32 to vector<1x8x1xi32>
    %309 = arith.cmpi slt, %21, %308 : vector<1x8x1xi32>
    %310 = vector.broadcast %309 : vector<1x8x1xi1> to vector<2x8x1xi1>
    %311 = arith.andi %307, %310 : vector<2x8x1xi1>
    %cst_159 = arith.constant -1.000000e+30 : f32
    %312 = vector.broadcast %cst_159 : f32 to vector<2x8x1xf32>
    %313 = arith.select %311, %304, %312 : vector<2x8x1xi1>, vector<2x8x1xf32>
    %cst_160 = arith.constant dense<0xFF800000> : vector<2x1xf32>
    %314 = vector.multi_reduction <maximumf>, %313, %cst_160 [1] : vector<2x8x1xf32> to vector<2x1xf32>
    %315 = vector.shape_cast %314 : vector<2x1xf32> to vector<2x1x1xf32>
    %316 = vector.broadcast %315 : vector<2x1x1xf32> to vector<2x8x1xf32>
    %317 = arith.subf %313, %316 : vector<2x8x1xf32>
    %318 = math.exp %317 : vector<2x8x1xf32>
    %cst_161 = arith.constant 0.000000e+00 : f32
    %319 = vector.broadcast %cst_161 : f32 to vector<2x8x1xf32>
    %320 = arith.select %311, %318, %319 : vector<2x8x1xi1>, vector<2x8x1xf32>
    %cst_162 = arith.constant dense<0.000000e+00> : vector<2x1xf32>
    %321 = vector.multi_reduction <add>, %320, %cst_162 [1] : vector<2x8x1xf32> to vector<2x1xf32>
    %322 = vector.shape_cast %321 : vector<2x1xf32> to vector<2x1x1xf32>
    %323 = vector.broadcast %322 : vector<2x1x1xf32> to vector<2x8x1xf32>
    %324 = arith.divf %320, %323 : vector<2x8x1xf32>
    "tpu.trace_start"() <{level = 10 : i32, message = "btq,btd->bqd"}> : () -> ()
    %cst_163 = arith.constant dense<0.000000e+00> : vector<2x1x32xf32>
    %325 = tpu.matmul %324, %303, %cst_163 {dimension_numbers = #tpu.dot_dimension_numbers<[1], [1], [2], [2], [0, 0, 0, 2, 1, 2], [0], [0]>} : vector<2x8x1xf32>, vector<2x8x32xf32>, vector<2x1x32xf32> -> vector<2x1x32xf32>
    "tpu.trace_stop"() : () -> ()
    %326 = math.tanh %325 : vector<2x1x32xf32>
    %c0_164 = arith.constant 0 : index
    %327 = arith.index_cast %c7_i32 : i32 to index
    %c0_165 = arith.constant 0 : index
    %328 = vector.load %arg12[%c0_164, %327, %c0_165] : memref<2x8x32xf32, #tpu.memory_space<vmem>>, vector<2x1x32xf32>
    %c0_166 = arith.constant 0 : index
    %329 = arith.index_cast %c7_i32 : i32 to index
    %c0_167 = arith.constant 0 : index
    %330 = vector.load %arg11[%c0_166, %329, %c0_167] : memref<2x8x32xf32, #tpu.memory_space<vmem>>, vector<2x1x32xf32>
    %c0_i32_168 = arith.constant 0 : i32
    %331 = vector.broadcast %c0_i32_168 : i32 to vector<2x1x1xi32>
    %332 = arith.cmpi sge, %300, %331 : vector<2x1x1xi32>
    %c-1_i32_169 = arith.constant -1 : i32
    %333 = vector.broadcast %c-1_i32_169 : i32 to vector<2x1x1xi32>
    %334 = arith.cmpi eq, %300, %333 : vector<2x1x1xi32>
    %335 = vector.shape_cast %334 : vector<2x1x1xi1> to vector<2x1x1xi1>
    %336 = vector.broadcast %335 : vector<2x1x1xi1> to vector<2x1x32xi1>
    %337 = arith.select %336, %328, %330 : vector<2x1x32xi1>, vector<2x1x32xf32>
    %338 = vector.shape_cast %332 : vector<2x1x1xi1> to vector<2x1x1xi1>
    %339 = vector.broadcast %338 : vector<2x1x1xi1> to vector<2x1x32xi1>
    %340 = arith.select %339, %326, %337 : vector<2x1x32xi1>, vector<2x1x32xf32>
    %c0_170 = arith.constant 0 : index
    %341 = arith.index_cast %c7_i32 : i32 to index
    %c0_171 = arith.constant 0 : index
    %342 = vector.load %arg11[%c0_170, %341, %c0_171] : memref<2x8x32xf32, #tpu.memory_space<vmem>>, vector<2x1x32xf32>
    tpu.vector_store %arg11[%c0_170, %341, %c0_171], %340 {strides = array<i32>} : memref<2x8x32xf32, #tpu.memory_space<vmem>>, vector<2x1x32xf32>,
    %c7_i32_172 = arith.constant 7 : i32
    %c0_173 = arith.constant 0 : index
    %c0_174 = arith.constant 0 : index
    %c0_175 = arith.constant 0 : index
    %343 = vector.load %arg12[%c0_173, %c0_174, %c0_175] : memref<2x8x32xf32, #tpu.memory_space<vmem>>, vector<2x8x32xf32>
    %c0_176 = arith.constant 0 : index
    %c0_177 = arith.constant 0 : index
    %c0_178 = arith.constant 0 : index
    %344 = vector.load %arg11[%c0_176, %c0_177, %c0_178] : memref<2x8x32xf32, #tpu.memory_space<vmem>>, vector<2x8x32xf32>
    %345 = vector.shape_cast %343 : vector<2x8x32xf32> to vector<16x32xf32>
    %c0_179 = arith.constant 0 : index
    %c0_180 = arith.constant 0 : index
    %346 = vector.load %arg9[%c0_179, %c0_180] : memref<32x32xf32, #tpu.memory_space<vmem>>, vector<32x32xf32>
    %cst_181 = arith.constant dense<0.000000e+00> : vector<16x32xf32>
    %347 = tpu.matmul %345, %346, %cst_181 {dimension_numbers = #tpu.dot_dimension_numbers<[1], [0], [0], [1], [0, 0, 1, 1], [], []>} : vector<16x32xf32>, vector<32x32xf32>, vector<16x32xf32> -> vector<16x32xf32>
    %c0_182 = arith.constant 0 : index
    %c0_183 = arith.constant 0 : index
    %348 = vector.load %arg10[%c0_182, %c0_183] : memref<1x32xf32, #tpu.memory_space<vmem>>, vector<1x32xf32>
    %349 = vector.broadcast %348 : vector<1x32xf32> to vector<16x32xf32>
    %350 = arith.addf %347, %349 : vector<16x32xf32>
    %351 = vector.shape_cast %350 : vector<16x32xf32> to vector<2x8x32xf32>
    %352 = arith.mulf %351, %344 : vector<2x8x32xf32>
    %cst_184 = arith.constant 0.000000e+00 : f32
    %353 = vector.broadcast %cst_184 : f32 to vector<2x8x32xf32>
    %354 = arith.maximumf %352, %353 : vector<2x8x32xf32>
    %355 = arith.addf %354, %343 : vector<2x8x32xf32>
    %c0_185 = arith.constant 0 : index
    %c0_186 = arith.constant 0 : index
    %c0_187 = arith.constant 0 : index
    %356 = vector.load %arg11[%c0_185, %c0_186, %c0_187] : memref<2x8x32xf32, #tpu.memory_space<vmem>>, vector<2x8x32xf32>
    tpu.vector_store %arg11[%c0_185, %c0_186, %c0_187], %355 {strides = array<i32>} : memref<2x8x32xf32, #tpu.memory_space<vmem>>, vector<2x8x32xf32>,
    return
  }
  func.func @transform_0(%arg0: i32) -> (i32, i32, i32) {
    %c0_i32 = arith.constant 0 : i32
    %c0_i32_0 = arith.constant 0 : i32
    %c0_i32_1 = arith.constant 0 : i32
    return %arg0, %c0_i32, %c0_i32_0 : i32, i32, i32
  }
  func.func @transform_1(%arg0: i32) -> (i32, i32, i32) {
    %c0_i32 = arith.constant 0 : i32
    %c0_i32_0 = arith.constant 0 : i32
    %c0_i32_1 = arith.constant 0 : i32
    return %arg0, %c0_i32, %c0_i32_0 : i32, i32, i32
  }
  func.func @transform_2(%arg0: i32) -> (i32, i32, i32) {
    %c0_i32 = arith.constant 0 : i32
    %c0_i32_0 = arith.constant 0 : i32
    %c0_i32_1 = arith.constant 0 : i32
    return %arg0, %c0_i32, %c0_i32_0 : i32, i32, i32
  }
  func.func @transform_3(%arg0: i32) -> (i32, i32) {
    %c0_i32 = arith.constant 0 : i32
    %c0_i32_0 = arith.constant 0 : i32
    %c0_i32_1 = arith.constant 0 : i32
    return %c0_i32, %c0_i32_0 : i32, i32
  }
  func.func @transform_4(%arg0: i32) -> (i32, i32) {
    %c0_i32 = arith.constant 0 : i32
    %c0_i32_0 = arith.constant 0 : i32
    %c0_i32_1 = arith.constant 0 : i32
    return %c0_i32, %c0_i32_0 : i32, i32
  }
  func.func @transform_5(%arg0: i32) -> (i32, i32) {
    %c0_i32 = arith.constant 0 : i32
    %c0_i32_0 = arith.constant 0 : i32
    %c0_i32_1 = arith.constant 0 : i32
    return %c0_i32, %c0_i32_0 : i32, i32
  }
  func.func @transform_6(%arg0: i32) -> (i32, i32) {
    %c0_i32 = arith.constant 0 : i32
    %c0_i32_0 = arith.constant 0 : i32
    %c0_i32_1 = arith.constant 0 : i32
    return %c0_i32, %c0_i32_0 : i32, i32
  }
  func.func @transform_7(%arg0: i32) -> (i32, i32) {
    %c0_i32 = arith.constant 0 : i32
    %c0_i32_0 = arith.constant 0 : i32
    %c0_i32_1 = arith.constant 0 : i32
    return %c0_i32, %c0_i32_0 : i32, i32
  }
  func.func @transform_8(%arg0: i32) -> (i32, i32) {
    %c0_i32 = arith.constant 0 : i32
    %c0_i32_0 = arith.constant 0 : i32
    %c0_i32_1 = arith.constant 0 : i32
    return %c0_i32, %c0_i32_0 : i32, i32
  }
  func.func @transform_9(%arg0: i32) -> (i32, i32) {
    %c0_i32 = arith.constant 0 : i32
    %c0_i32_0 = arith.constant 0 : i32
    %c0_i32_1 = arith.constant 0 : i32
    return %c0_i32, %c0_i32_0 : i32, i32
  }
  func.func @transform_10(%arg0: i32) -> (i32, i32, i32) {
    %c0_i32 = arith.constant 0 : i32
    %c0_i32_0 = arith.constant 0 : i32
    %c0_i32_1 = arith.constant 0 : i32
    return %arg0, %c0_i32, %c0_i32_0 : i32, i32, i32
  }
}

</mosaic_0001>

<bundles_post_ra>
// kernel: tpu_custom_call.1
= control target key start
LH: loop header
LB: loop body
LE: loop exit
PB: predicated region body
PF: predicated region fallthrough
CT: control target
= control target key end

     0   :  { %15 = vsyncpa [#allocation5], 0  ;;  %s3688_s0 = inlined_call_operand.vmem [shape: s32[2,8,1], index: 0, kind: input, shape index: {}]   ;;  %s3689_s1 = inlined_call_operand.vmem [shape: s32[2,1,1], index: 1, kind: input, shape index: {}]   ;;  %s3690_s2 = inlined_call_operand.hbm [shape: f32[2,8,32], index: 2, kind: input, shape index: {}]   ;;  %s3691_s3 = inlined_call_operand.vmem [shape: f32[32,32], index: 3, kind: input, shape index: {}]   ;;  %s3692_s4 = inlined_call_operand.vmem [shape: f32[1,32], index: 4, kind: input, shape index: {}]   ;;  %s3693_s5 = inlined_call_operand.hbm [shape: f32[32,32], index: 5, kind: input, shape index: {}]   ;;  %s3694_s6 = inlined_call_operand.vmem [shape: f32[1,32], index: 6, kind: input, shape index: {}]   ;;  %s3695_s7 = inlined_call_operand.vmem [shape: f32[1,32], index: 7, kind: input, shape index: {}]   ;;  %s3696_s8 = inlined_call_operand.hbm [shape: f32[32,32], index: 8, kind: input, shape index: {}]   ;;  %s3697_s9 = inlined_call_operand.vmem [shape: f32[1,32], index: 9, kind: input, shape index: {}]   ;;  %s3698_s10 = inlined_call_operand.hbm [shape: f32[2,8,32], index: 10, kind: output, shape index: {}]  }
   0x1   :  { %16 = vsyncpa [#allocation8], 0 }
   0x2   :  { %17 = vsyncpa [#allocation6], 0  ;;  %s3120_s13 = smov [#allocation7]   ;;  %s3121_s15 = smov [#allocation4]  }
   0x3   :  { %s43_s14 = sshll.u32 %s3120_s13, 4  ;;  %s27_s16 = sshll.u32 %s3121_s15, 4  ;;  %s44_s14 = int_to_ptr.vmem [resolvable:$true] %s43_s14  ;;  %s3184_s16 = int_to_ptr.vmem [resolvable:$true] %s27_s16 }
   0x4   :  { %s3026_s19 = scalar_lea.hbm %s3693_s5, 512 }
   0x5   :  { %p3027_p0 = scmp.ne.s32.totalorder %s3693_s5, %s3026_s19  ;;  %p3030_p1 = scmp.lt.u32.totalorder %s3026_s19, %s3693_s5 }
   0x7   :  { %p3032_p2 = pnand %p3030_p1, %p3027_p0 }
   0x9   :  { %3035 = shalt.err (!%p3032_p2)
}
   0xa   :  { %s3036_s24 = scalar_lea.vmem %s44_s14, 512  ;;  %p3041_p4 = scmp.lt.s32.totalorder %s44_s14, %s44_s14 }
   0xb   :  { %p3037_p3 = scmp.ne.s32.totalorder %s44_s14, %s3036_s24  ;;  %p3042_p5 = scmp.lt.s32.totalorder %s3036_s24, %s3036_s24 }
   0xd   :  { %p3043_p6 = por %p3042_p5, %p3041_p4 }
   0xf   :  { %p3044_p7 = pnand %p3043_p6, %p3037_p3 }
  0x11   :  { %3047 = shalt.err (!%p3044_p7)
}
  0x12   :  { %s3122_s25 = smov 128   ;;  %s3123_s26 = smov 8  }
  0x13   :  { %49 = dma.hbm_to_vmem [thread:$0]  %s3693_s5, 512, %s44_s14, [#allocation8], %s3122_s25, %s3122_s25, %s3123_s26  }
  0x14   :  { %s3048_s11 = scalar_lea.hbm %s3690_s2, 256 }
  0x15   :  { %p3049_p8 = scmp.ne.s32.totalorder %s3690_s2, %s3048_s11  ;;  %p3052_p9 = scmp.lt.u32.totalorder %s3048_s11, %s3690_s2 }
  0x17   :  { %p3054_p10 = pnand %p3052_p9, %p3049_p8 }
  0x19   :  { %3057 = shalt.err (!%p3054_p10)
}
  0x1a   :  { %s3058_s18 = scalar_lea.vmem %s3184_s16, 256  ;;  %p3063_p12 = scmp.lt.s32.totalorder %s3184_s16, %s3184_s16 }
  0x1b   :  { %p3059_p11 = scmp.ne.s32.totalorder %s3184_s16, %s3058_s18  ;;  %p3064_p13 = scmp.lt.s32.totalorder %s3058_s18, %s3058_s18 }
  0x1d   :  { %p3065_p0 = por %p3064_p13, %p3063_p12 }
  0x1f   :  { %p3066_p1 = pnand %p3065_p0, %p3059_p11 }
  0x21   :  { %3069 = shalt.err (!%p3066_p1)
}
  0x22   :  { %33 = dma.hbm_to_vmem [thread:$0]  %s3690_s2, 256, %s3184_s16, [#allocation5], %s3122_s25, %s3122_s25, %s3123_s26  }
  0x23   :  { %s3124_s19 = smov [#allocation9]   ;;  %s3070_s23 = scalar_lea.hbm %s3696_s8, 512 }
  0x24   :  { %s59_s20 = sshll.u32 %s3124_s19, 4  ;;  %p3071_p2 = scmp.ne.s32.totalorder %s3696_s8, %s3070_s23  ;;  %s60_s20 = int_to_ptr.vmem [resolvable:$true] %s59_s20 }
  0x25   :  { %p3074_p3 = scmp.lt.u32.totalorder %s3070_s23, %s3696_s8 }
  0x27   :  { %p3076_p4 = pnand %p3074_p3, %p3071_p2 }
  0x29   :  { %3079 = shalt.err (!%p3076_p4)
}
  0x2a   :  { %s3080_s30 = scalar_lea.vmem %s60_s20, 512  ;;  %p3085_p6 = scmp.lt.s32.totalorder %s60_s20, %s60_s20 }
  0x2b   :  { %p3081_p5 = scmp.ne.s32.totalorder %s60_s20, %s3080_s30  ;;  %p3086_p7 = scmp.lt.s32.totalorder %s3080_s30, %s3080_s30 }
  0x2d   :  { %p3087_p8 = por %p3086_p7, %p3085_p6 }
  0x2f   :  { %p3088_p9 = pnand %p3087_p8, %p3081_p5 }
  0x31   :  { %3091 = shalt.err (!%p3088_p9)
}
  0x32   :  { %65 = dma.hbm_to_vmem [thread:$0]  %s3696_s8, 512, %s60_s20, [#allocation8], %s3122_s25, %s3122_s25, %s3123_s26  }
  0x33   :  { %3114 = dma.done.wait [#allocation5], 256  }
  0x34   :  { %3115 = vsyncadd [#allocation5], 4294967040 }
  0x35   :  { %3116 = dma.done.wait [#allocation8], 1024  }
  0x36   :  { %3117 = vsyncadd [#allocation8], 4294966272  ;;  %v279_v0 = vlaneseq  ;;  %v3125_v1 = vmov 0   ;;  %vm90_vm0 = vcmask 261120   ;;  %v79_v3 = vld [vmem:[%s3691_s3] sm:$0xff]  ;;  %v80_v4 = vld [vmem:[%s3691_s3 + $0x8] sm:$0xff] }
  0x37   :  { %2940 = vset.pattern.permute.xlu0 %v3125_v1  ;;  %v81_v5 = vld [vmem:[%s3691_s3 + $0x10] sm:$0xff]  ;;  %v2907_v6 = vpack.c.bf16 %v80_v4, %v79_v3  ;;  %v82_v7 = vld [vmem:[%s3691_s3 + $0x18] sm:$0xff]  ;;  %v77_v8 = vld [vmem:[#allocation4] sm:$0xff]  ;;  %v3126_v15 = vmov 0.0   ;;  %vm3127_vm6 = vmmov 0   ;;  %vm355_vm10 = vcmask 7168  }
  0x38   :  { %v3237_v2 = vshrl.u32 %v279_v0, 7  ;;  %v2911_v9 = vpack.c.bf16 %v82_v7, %v81_v5  ;;  %2812 = vmatprep.mubr.msk.f32.mxu0 %vm90_vm0, %v77_v8  ;;  %v2723_v10 = vld [vmem:[%s3689_s1] ss:$0 sm:$0xff]  ;;  %v2724_v11 = vld [vmem:[%s3689_s1 + $0x1] ss:$0 sm:$0xff]  ;;  %v176_v12 = vld [vmem:[#allocation7] sm:$0xff] }
  0x39   :  { %2908 = vmatprep.subr.bf16.mxu0 %v2907_v6  ;;  %v177_v13 = vld [vmem:[#allocation7 + $0x8] sm:$0xff]  ;;  %v78_v18 = vld [vmem:[#allocation4 + $0x8] sm:$0xff]  ;;  %v178_v19 = vld [vmem:[#allocation7 + $0x10] sm:$0xff]  ;;  %s3128_s28 = smov [#allocation10]  }
  0x3a   :  { %vm281_vm1 = vcmp.eq.s32.totalorder %v3237_v2, 0  ;;  %vm292_vm2 = vcmp.eq.s32.totalorder %v3237_v2, %v2723_v10  ;;  %vm293_vm3 = vcmp.eq.s32.totalorder %v3237_v2, %v2724_v11  ;;  %2910 = vmatpush3.bf16.msra.mxu0 %v2907_v6  ;;  %v2915_v14 = vpack.c.bf16 %v177_v13, %v176_v12  ;;  %v179_v20 = vld [vmem:[#allocation7 + $0x18] sm:$0xff]  ;;  %v2716_v23 = vld [vmem:[%s3692_s4] ss:$0 sm:$0xff]  ;;  %v3303_v50 = vld [vmem:[%s3688_s0 + $0x1] sm:$0x1] }
  0x3b   :  { %vm296_vm4 = vmor %vm281_vm1, %vm292_vm2  ;;  %2912 = vmatprep.subr.bf16.mxu0 %v2911_v9  ;;  %v2919_v21 = vpack.c.bf16 %v179_v20, %v178_v19  ;;  %v2719_v34 = vld [vmem:[%s3694_s6] ss:$0 sm:$0xff]  ;;  %v3298_v49 = vsub.s32 0, %v3237_v2  ;;  %v3310_v52 = vld [vmem:[%s3688_s0 + $0x9] sm:$0x1]  ;;  %vm348_vm8 = vcmp.lt.s32.totalorder %v3237_v2, 1 }
  0x3c   :  { %v2725_v16 = vsel %vm296_vm4, 1.0, %v3126_v15  ;;  %vm297_vm5 = vmor %vm281_vm1, %vm293_vm3  ;;  %2916 = vmatprep.subr.bf16.mxu1 %v2915_v14  ;;  %v2722_v36 = vld [vmem:[%s3695_s7] ss:$0 sm:$0xff]  ;;  %vm616_vm13 = vcmp.eq.s32.totalorder %v3310_v52, 4294967295  ;;  %vm615_vm14 = vcmp.eq.s32.totalorder %v3303_v50, 4294967295  ;;  %vm613_vm15 = vcmp.ge.s32.totalorder %v3303_v50, 0 }
  0x3d   :  { %304 = vperm.xlu0 %2940, %v2725_v16   ;;  %v2726_v17 = vsel %vm297_vm5, 1.0, %v3126_v15  ;;  %2918 = vmatpush3.bf16.msra.mxu1 %v2915_v14  ;;  %v341_v51 = vrot.slane %v3303_v50, %v3298_v49  ;;  %v345_v53 = vrot.slane %v3310_v52, %v3298_v49  ;;  %vm614_vm1 = vcmp.ge.s32.totalorder %v3310_v52, 0  ;;  %s2703_s29 = sshll.u32 %s3128_s28, 4  ;;  %s2704_s29 = int_to_ptr.vmem [resolvable:$true] %s2703_s29 }
  0x3e   :  { %2914 = vmatpush3.bf16.msra.mxu0 %v2911_v9  ;;  %2920 = vmatprep.subr.bf16.mxu1 %v2919_v21  ;;  %vm428_vm2 = vcmask 64512   ;;  %vm641_vm4 = vcmask 253952   ;;  %p3097_p11 = scmp.lt.s32.totalorder %s2704_s29, %s2704_s29 }
  0x3f   :  { %2836 = vmatprep.subr.mxu0 %v3126_v15  ;;  %vm346_vm7 = vcmp.ge.s32.totalorder %v3237_v2, %v341_v51  ;;  %vm347_vm11 = vcmp.ge.s32.totalorder %v3237_v2, %v345_v53 }
  0x40   :  { %vm3316_vm9 = vmand %vm346_vm7, %vm348_vm8 }
  0x41   :  { %309 = vperm.xlu0 %2940, %v2726_v17   ;;  %2813 = vmatmul.mubr.msk.f32.vlgmr.msra.gmra.mrb[0].mxu0 %vm90_vm0, %v78_v18  ;;  %vm3324_vm12 = vmand %vm347_vm11, %vm348_vm8  ;;  %vm676_vm11 = vcmp.lt.s32.totalorder %v3237_v2, 2 }
  0x42   :  { %2922 = vmatpush3.bf16.msra.mxu1 %v2919_v21  ;;  %2838 = vmatprep.mubr.msk.f32.mxu0 %vm3127_vm6, %v3126_v15 }
  0x43   :  { %2826 = vmatprep.subr.mxu1 %v3126_v15 }
  0xbc   :  { %v305_v22 = vpop.permute.xlu0 %304 }
  0xc0   :  { %v310_v28 = vpop.permute.xlu0 %309 }
 0x114   :  { %v2814_v24 = vpop.f32.mrb[0].mxu0 }
 0x115   :  { %v169_v25 = vadd.f32 %v2814_v24, %v2716_v23  ;;  %v163_v26 = vpop.f32.mrb[1].mxu0 }
 0x116   :  { %v164_v27 = vadd.f32 %v2716_v23, %v163_v26 }
 0x117   :  { %v173_v29 = vmax.f32 %v169_v25, 0.0 }
 0x118   :  { %v172_v30 = vmax.f32 %v164_v27, 0.0 }
 0x119   :  { %175 = vst.msk [vmem:[#allocation2 + $0x8] sm:$0xff] %vm90_vm0, %v173_v29  ;;  %v313_v31 = vmul.f32 %v310_v28, %v173_v29 }
 0x11a   :  { %174 = vst.msk [vmem:[#allocation2] sm:$0xff] %vm90_vm0, %v172_v30  ;;  %v312_v32 = vmul.f32 %v305_v22, %v172_v30  ;;  %2823 = vmatprep.mubr.msk.f32.mxu1 %vm90_vm0, %v172_v30 }
 0x11b   :  { %315 = vst.msk [vmem:[#allocation10 + $0x8] sm:$0xff] %vm90_vm0, %v313_v31  ;;  %2824 = vmatmul.mubr.msk.f32.vlgmr.msra.gmra.mrb[0].mxu1 %vm90_vm0, %v173_v29 }
 0x11c   :  { %314 = vst.msk [vmem:[#allocation10] sm:$0xff] %vm90_vm0, %v312_v32  ;;  %2828 = vmatprep.mubr.msk.f32.mxu1 %vm3127_vm6, %v3126_v15 }
 0x121   :  { %v609_v54 = vld [vmem:[#allocation2 + $0x1] sm:$0x1] }
 0x122   :  { %v3288_v45 = vld [vmem:[#allocation10 + $0x8] sm:$0xff] }
 0x123   :  { %v320_v33 = vld [vmem:[#allocation10] sm:$0xff] }
 0x124   :  { %2827 = vmatpush3.msra.mxu1 %v320_v33  ;;  %v611_v53 = vld [vmem:[#allocation10 + $0x1] sm:$0x1] }
 0x125   :  { %2831 = vmatprep.subr.mxu1 %v3126_v15 }
 0x1ee   :  { %v2825_v35 = vpop.f32.mrb[0].mxu1 }
 0x1ef   :  { %v265_v37 = vadd.f32 %v2825_v35, %v2719_v34  ;;  %v259_v38 = vpop.f32.mrb[1].mxu1 }
 0x1f0   :  { %v260_v39 = vadd.f32 %v2719_v34, %v259_v38 }
 0x1f1   :  { %v276_v40 = vmul.f32 %v2722_v36, %v265_v37 }
 0x1f2   :  { %v275_v41 = vmul.f32 %v2722_v36, %v260_v39  ;;  %v618_v39 = vsel %vm616_vm13, 1, %v3125_v1 }
 0x1f3   :  { %278 = vst.msk [vmem:[#allocation3 + $0x8] sm:$0xff] %vm90_vm0, %v276_v40  ;;  %v617_v40 = vsel %vm615_vm14, 1, %v3125_v1 }
 0x1f4   :  { %277 = vst.msk [vmem:[#allocation3] sm:$0xff] %vm90_vm0, %v275_v41  ;;  %v629_v41 = vsel %vm613_vm15, 1, %v3125_v1 }
 0x1fa   :  { %v2728_v43 = vld [vmem:[#allocation3 + $0x9] ss:$0 sm:$0xff] }
 0x1fb   :  { %v2727_v42 = vld [vmem:[#allocation3 + $0x1] ss:$0 sm:$0xff]  ;;  %v334_v47 = vmul.f32 %v2728_v43, %v3288_v45 }
 0x1fc   :  { %v326_v44 = vmul.f32 %v2727_v42, %v320_v33  ;;  %v630_v42 = vsel %vm614_vm1, 1, %v3125_v1 }
 0x1fd   :  { %v335_v48 = vsel %vm90_vm0, %v334_v47, 0.0 }
 0x1fe   :  { %v327_v46 = vsel %vm90_vm0, %v326_v44, 0.0 }
 0x1ff   :  { %328 = vadd.xlane.f32.xlu1 %v327_v46 }
 0x203   :  { %336 = vadd.xlane.f32.xlu1 %v335_v48 }
 0x28c   :  { %v329_v55 = vpop.xlane.xlu1 %328 }
 0x28d   :  { %v353_v56 = vsel %vm3316_vm9, %v329_v55, -1e+30 }
 0x28e   :  { %v356_v57 = vsel %vm355_vm10, %v353_v56, -inf }
 0x28f   :  { %v357_v59 = vrot.slane %v356_v57, 4 }
 0x290   :  { %v337_v60 = vpop.xlane.xlu1 %336 }
 0x291   :  { %v358_v61 = vmax.f32 %v356_v57, %v357_v59  ;;  %v354_v62 = vsel %vm3324_vm12, %v337_v60, -1e+30  ;;  %v610_v59 = vld [vmem:[#allocation2 + $0x9] sm:$0x1]  ;;  %v612_v60 = vld [vmem:[#allocation10 + $0x9] sm:$0x1] }
 0x292   :  { %v363_v63 = vsel %vm355_vm10, %v354_v62, -inf }
 0x293   :  { %v359_v0 = vrot.slane %v358_v61, 2  ;;  %v364_v3 = vrot.slane %v363_v63, 4 }
 0x295   :  { %v360_v4 = vmax.f32 %v358_v61, %v359_v0  ;;  %v365_v5 = vmax.f32 %v363_v63, %v364_v3  ;;  %v2731_v3 = vld [vmem:[#allocation3 + $0x2] ss:$0 sm:$0xff] }
 0x297   :  { %v361_v6 = vrot.slane %v360_v4, 1  ;;  %v366_v7 = vrot.slane %v365_v5, 2 }
 0x299   :  { %v362_v8 = vmax.f32 %v360_v4, %v361_v6  ;;  %v367_v9 = vmax.f32 %v365_v5, %v366_v7  ;;  %v2732_v7 = vld [vmem:[#allocation3 + $0xa] ss:$0 sm:$0xff] }
 0x29b   :  { %v370_v10 = vsub.f32 %v353_v56, %v362_v8  ;;  %v368_v11 = vrot.slane %v367_v9, 1 }
 0x29d   :  { %v372_v12 = vmul.f32 1.442695, %v370_v10  ;;  %v369_v13 = vmax.f32 %v367_v9, %v368_v11  ;;  %v3363_v10 = vld [vmem:[%s3688_s0 + $0x2] sm:$0x1] }
 0x29e   :  { %v669_v11 = vrot.slane %v3363_v10, %v3298_v49 }
 0x29f   :  { %2942 = vpow2.f32 %v372_v12  ;;  %v371_v14 = vsub.f32 %v354_v62, %v369_v13  ;;  %v645_v12 = vld [vmem:[%s3688_s0 + $0xa] sm:$0x1] }
 0x2a0   :  { %v673_v13 = vrot.slane %v645_v12, %v3298_v49  ;;  %vm942_vm15 = vcmp.eq.s32.totalorder %v645_v12, 4294967295  ;;  %vm940_vm1 = vcmp.ge.s32.totalorder %v645_v12, 0 }
 0x2a1   :  { %v374_v16 = vmul.f32 1.442695, %v371_v14  ;;  %v937_v14 = vld [vmem:[#allocation10 + $0x2] sm:$0x1] }
 0x2a2   :  { %vm675_vm13 = vcmp.ge.s32.totalorder %v3237_v2, %v673_v13  ;;  %v935_v13 = vld [vmem:[#allocation2 + $0x2] sm:$0x1] }
 0x2a3   :  { %2944 = vpow2.f32 %v374_v16  ;;  %vm3381_vm14 = vmand %vm675_vm13, %vm676_vm11  ;;  %vm1001_vm13 = vcmp.lt.s32.totalorder %v3237_v2, 3 }
 0x2a9   :  { %v2943_v17 = vpop.eup %2942 }
 0x2aa   :  { %v376_v18 = vsel %vm3316_vm9, %v2943_v17, 0.0  ;;  %vm674_vm9 = vcmp.ge.s32.totalorder %v3237_v2, %v669_v11 }
 0x2ab   :  { %v378_v19 = vsel %vm355_vm10, %v376_v18, 0.0 }
 0x2ac   :  { %v379_v20 = vrot.slane %v378_v19, 4 }
 0x2ad   :  { %v2945_v21 = vpop.eup %2944 }
 0x2ae   :  { %v380_v22 = vadd.f32 %v379_v20, %v378_v19  ;;  %v377_v23 = vsel %vm3324_vm12, %v2945_v21, 0.0  ;;  %vm3373_vm12 = vmand %vm674_vm9, %vm676_vm11 }
 0x2af   :  { %v385_v24 = vsel %vm355_vm10, %v377_v23, 0.0 }
 0x2b0   :  { %v381_v25 = vrot.slane %v380_v22, 2  ;;  %v386_v26 = vrot.slane %v385_v24, 4 }
 0x2b2   :  { %v382_v27 = vadd.f32 %v381_v25, %v380_v22  ;;  %v387_v28 = vadd.f32 %v386_v26, %v385_v24 }
 0x2b4   :  { %v383_v29 = vrot.slane %v382_v27, 1  ;;  %v388_v30 = vrot.slane %v387_v28, 2 }
 0x2b6   :  { %v384_v31 = vadd.f32 %v383_v29, %v382_v27  ;;  %v389_v32 = vadd.f32 %v388_v30, %v387_v28 }
 0x2b8   :  { %2946 = vrcp.f32 %v384_v31  ;;  %v390_v33 = vrot.slane %v389_v32, 1 }
 0x2ba   :  { %v391_v34 = vadd.f32 %v390_v33, %v389_v32 }
 0x2bc   :  { %2948 = vrcp.f32 %v391_v34 }
 0x2c2   :  { %v2947_v35 = vpop.eup %2946 }
 0x2c3   :  { %v393_v36 = vmul.f32 %v2947_v35, %v376_v18 }
 0x2c5   :  { %396 = vxpose.xlu0.b32.start.end [1/1] (short) (narrow) %v393_v36, 8 }
 0x2c6   :  { %v2949_v37 = vpop.eup %2948 }
 0x2c7   :  { %v395_v38 = vmul.f32 %v2949_v37, %v377_v23 }
 0x2c9   :  { %502 = vxpose.xlu1.b32.start.end [1/1] (short) (narrow) %v395_v38, 8 }
 0x2e7   :  { %2941 = vset.pattern.permute.xlu1 %v3125_v1 }
 0x2e8   :  { %623 = vperm.xlu1 %2941, %v618_v39  }
 0x2ee   :  { %620 = vperm.xlu0 %2940, %v617_v40  }
 0x2f2   :  { %632 = vperm.xlu0 %2940, %v629_v41  }
 0x2f6   :  { %635 = vperm.xlu0 %2940, %v630_v42  }
 0x345   :  { %v412_v43 = vpop.trf.xlu0 }
 0x346   :  { %2829 = vmatmul.mubr.msk.f32.vlgmr.msra.gmra.mrb[2].mxu1 %vm428_vm2, %v412_v43 }
 0x347   :  { %2832 = vmatpush3.msra.mxu1 %v3288_v45  ;;  %2833 = vmatprep.mubr.msk.f32.mxu1 %vm3127_vm6, %v3126_v15 }
 0x348   :  { %2841 = vmatprep.subr.mxu1 %v3126_v15 }
 0x349   :  { %v518_v44 = vpop.trf.xlu1 }
 0x34a   :  { %2834 = vmatmul.mubr.msk.f32.vlgmr.msra.gmra.mrb[4].mxu1 %vm428_vm2, %v518_v44 }
 0x34b   :  { %2843 = vmatprep.mubr.msk.f32.mxu1 %vm3127_vm6, %v3126_v15 }
 0x367   :  { %v624_v45 = vpop.permute.xlu1 %623 }
 0x368   :  { %vm626_vm7 = vcmp.eq.s32.totalorder %v624_v45, 1 }
 0x369   :  { %v628_v62 = vsel %vm626_vm7, %v610_v59, %v612_v60 }
 0x36d   :  { %v621_v46 = vpop.permute.xlu0 %620 }
 0x36e   :  { %vm625_vm3 = vcmp.eq.s32.totalorder %v621_v46, 1 }
 0x36f   :  { %v627_v56 = vsel %vm625_vm3, %v609_v54, %v611_v53  ;;  %vm941_vm3 = vcmp.eq.s32.totalorder %v3363_v10, 4294967295 }
 0x371   :  { %v633_v52 = vpop.permute.xlu0 %632 }
 0x372   :  { %vm637_vm5 = vcmp.eq.s32.totalorder %v633_v52, 1 }
 0x375   :  { %v636_v57 = vpop.permute.xlu0 %635 }
 0x376   :  { %vm638_vm8 = vcmp.eq.s32.totalorder %v636_v57, 1 }
 0x419   :  { %v498_v47 = vpop.f32.mrb[2].mxu1 }
 0x41a   :  { %2950 = vtanh.f32 %v498_v47  ;;  %v2830_v48 = vpop.f32.mrb[3].mxu1 }
 0x41d   :  { %v603_v50 = vpop.f32.mrb[4].mxu1 }
 0x41e   :  { %2952 = vtanh.f32 %v603_v50  ;;  %v2835_v51 = vpop.f32.mrb[5].mxu1 }
 0x424   :  { %v2951_v55 = vpop.eup %2950 }
 0x425   :  { %v639_v58 = vsel %vm637_vm5, %v2951_v55, %v627_v56  ;;  %vm939_vm5 = vcmp.ge.s32.totalorder %v3363_v10, 0 }
 0x426   :  { %642 = vst.msk [vmem:[#allocation10 + $0x1] sm:$0x1] %vm641_vm4, %v639_v58 }
 0x428   :  { %v2953_v61 = vpop.eup %2952 }
 0x429   :  { %v640_v63 = vsel %vm638_vm8, %v2953_v61, %v628_v62  ;;  %v944_v62 = vsel %vm942_vm15, 1, %v3125_v1 }
 0x42a   :  { %643 = vst.msk [vmem:[#allocation10 + $0x9] sm:$0x1] %vm641_vm4, %v640_v63  ;;  %v956_v63 = vsel %vm940_vm1, 1, %v3125_v1 }
 0x42d   :  { %v648_v0 = vld [vmem:[#allocation10] sm:$0xff] }
 0x42e   :  { %2837 = vmatpush3.msra.mxu0 %v648_v0  ;;  %v654_v4 = vmul.f32 %v2731_v3, %v648_v0  ;;  %v943_v0 = vsel %vm941_vm3, 1, %v3125_v1  ;;  %v955_v3 = vsel %vm939_vm5, 1, %v3125_v1 }
 0x42f   :  { %2846 = vmatprep.subr.mxu0 %v3126_v15 }
 0x430   :  { %v655_v5 = vsel %vm90_vm0, %v654_v4, 0.0 }
 0x431   :  { %656 = vadd.xlane.f32.xlu0 %v655_v5  ;;  %v649_v6 = vld [vmem:[#allocation10 + $0x8] sm:$0xff] }
 0x432   :  { %2842 = vmatpush3.msra.mxu1 %v649_v6  ;;  %v662_v8 = vmul.f32 %v2732_v7, %v649_v6 }
 0x433   :  { %2851 = vmatprep.subr.mxu1 %v3126_v15 }
 0x434   :  { %v663_v9 = vsel %vm90_vm0, %v662_v8, 0.0 }
 0x435   :  { %664 = vadd.xlane.f32.xlu1 %v663_v9 }
 0x4be   :  { %v657_v16 = vpop.xlane.xlu0 %656 }
 0x4bf   :  { %v681_v17 = vsel %vm3373_vm12, %v657_v16, -1e+30 }
 0x4c0   :  { %v683_v18 = vsel %vm355_vm10, %v681_v17, -inf }
 0x4c1   :  { %v684_v20 = vrot.slane %v683_v18, 4 }
 0x4c2   :  { %v665_v21 = vpop.xlane.xlu1 %664 }
 0x4c3   :  { %v685_v22 = vmax.f32 %v683_v18, %v684_v20  ;;  %v682_v23 = vsel %vm3381_vm14, %v665_v21, -1e+30  ;;  %v936_v20 = vld [vmem:[#allocation2 + $0xa] sm:$0x1]  ;;  %v938_v21 = vld [vmem:[#allocation10 + $0xa] sm:$0x1] }
 0x4c4   :  { %v690_v24 = vsel %vm355_vm10, %v682_v23, -inf }
 0x4c5   :  { %v686_v25 = vrot.slane %v685_v22, 2  ;;  %v691_v26 = vrot.slane %v690_v24, 4 }
 0x4c7   :  { %v687_v27 = vmax.f32 %v685_v22, %v686_v25  ;;  %v692_v28 = vmax.f32 %v690_v24, %v691_v26  ;;  %v2735_v26 = vld [vmem:[#allocation3 + $0x3] ss:$0 sm:$0xff] }
 0x4c9   :  { %v688_v29 = vrot.slane %v687_v27, 1  ;;  %v693_v30 = vrot.slane %v692_v28, 2 }
 0x4cb   :  { %v689_v31 = vmax.f32 %v687_v27, %v688_v29  ;;  %v694_v32 = vmax.f32 %v692_v28, %v693_v30  ;;  %v2736_v30 = vld [vmem:[#allocation3 + $0xb] ss:$0 sm:$0xff] }
 0x4cd   :  { %v697_v33 = vsub.f32 %v681_v17, %v689_v31  ;;  %v695_v34 = vrot.slane %v694_v32, 1 }
 0x4cf   :  { %v699_v35 = vmul.f32 1.442695, %v697_v33  ;;  %v696_v36 = vmax.f32 %v694_v32, %v695_v34  ;;  %v3415_v33 = vld [vmem:[%s3688_s0 + $0x3] sm:$0x1] }
 0x4d0   :  { %v994_v34 = vrot.slane %v3415_v33, %v3298_v49 }
 0x4d1   :  { %2954 = vpow2.f32 %v699_v35  ;;  %v698_v37 = vsub.f32 %v682_v23, %v696_v36  ;;  %v970_v35 = vld [vmem:[%s3688_s0 + $0xb] sm:$0x1] }
 0x4d2   :  { %v998_v36 = vrot.slane %v970_v35, %v3298_v49  ;;  %vm1267_vm3 = vcmp.eq.s32.totalorder %v970_v35, 4294967295  ;;  %vm1265_vm5 = vcmp.ge.s32.totalorder %v970_v35, 0 }
 0x4d3   :  { %v701_v38 = vmul.f32 1.442695, %v698_v37  ;;  %v1262_v37 = vld [vmem:[#allocation10 + $0x3] sm:$0x1] }
 0x4d4   :  { %vm1000_vm15 = vcmp.ge.s32.totalorder %v3237_v2, %v998_v36  ;;  %v1260_v36 = vld [vmem:[#allocation2 + $0x3] sm:$0x1] }
 0x4d5   :  { %2956 = vpow2.f32 %v701_v38  ;;  %vm3433_vm1 = vmand %vm1000_vm15, %vm1001_vm13  ;;  %vm1326_vm15 = vcmp.lt.s32.totalorder %v3237_v2, 4 }
 0x4db   :  { %v2955_v39 = vpop.eup %2954 }
 0x4dc   :  { %v703_v40 = vsel %vm3373_vm12, %v2955_v39, 0.0  ;;  %vm999_vm12 = vcmp.ge.s32.totalorder %v3237_v2, %v994_v34 }
 0x4dd   :  { %v705_v41 = vsel %vm355_vm10, %v703_v40, 0.0 }
 0x4de   :  { %v706_v42 = vrot.slane %v705_v41, 4 }
 0x4df   :  { %v2957_v43 = vpop.eup %2956 }
 0x4e0   :  { %v707_v44 = vadd.f32 %v706_v42, %v705_v41  ;;  %v704_v46 = vsel %vm3381_vm14, %v2957_v43, 0.0  ;;  %vm3425_vm14 = vmand %vm999_vm12, %vm1001_vm13 }
 0x4e1   :  { %v712_v47 = vsel %vm355_vm10, %v704_v46, 0.0 }
 0x4e2   :  { %v708_v48 = vrot.slane %v707_v44, 2  ;;  %v713_v50 = vrot.slane %v712_v47, 4 }
 0x4e4   :  { %v709_v51 = vadd.f32 %v708_v48, %v707_v44  ;;  %v714_v52 = vadd.f32 %v713_v50, %v712_v47 }
 0x4e6   :  { %v710_v45 = vrot.slane %v709_v51, 1  ;;  %v715_v53 = vrot.slane %v714_v52, 2 }
 0x4e8   :  { %v711_v54 = vadd.f32 %v710_v45, %v709_v51  ;;  %v716_v55 = vadd.f32 %v715_v53, %v714_v52 }
 0x4ea   :  { %2958 = vrcp.f32 %v711_v54  ;;  %v717_v56 = vrot.slane %v716_v55, 1 }
 0x4ec   :  { %v718_v57 = vadd.f32 %v717_v56, %v716_v55 }
 0x4ee   :  { %2960 = vrcp.f32 %v718_v57 }
 0x4f4   :  { %v2959_v58 = vpop.eup %2958 }
 0x4f5   :  { %v720_v59 = vmul.f32 %v2959_v58, %v703_v40 }
 0x4f7   :  { %723 = vxpose.xlu0.b32.start.end [1/1] (short) (narrow) %v720_v59, 8 }
 0x4f8   :  { %v2961_v60 = vpop.eup %2960 }
 0x4f9   :  { %v722_v61 = vmul.f32 %v2961_v60, %v704_v46 }
 0x4fb   :  { %828 = vxpose.xlu1.b32.start.end [1/1] (short) (narrow) %v722_v61, 8 }
 0x519   :  { %949 = vperm.xlu1 %2941, %v944_v62  }
 0x51d   :  { %961 = vperm.xlu1 %2941, %v956_v63  }
 0x520   :  { %946 = vperm.xlu0 %2940, %v943_v0  }
 0x524   :  { %958 = vperm.xlu0 %2940, %v955_v3  }
 0x577   :  { %v739_v4 = vpop.trf.xlu0 }
 0x578   :  { %2839 = vmatmul.mubr.msk.f32.vlgmr.msra.gmra.mrb[2].mxu0 %vm428_vm2, %v739_v4 }
 0x579   :  { %2848 = vmatprep.mubr.msk.f32.mxu0 %vm3127_vm6, %v3126_v15 }
 0x57b   :  { %v844_v5 = vpop.trf.xlu1 }
 0x57c   :  { %2844 = vmatmul.mubr.msk.f32.vlgmr.msra.gmra.mrb[6].mxu1 %vm428_vm2, %v844_v5 }
 0x57d   :  { %2853 = vmatprep.mubr.msk.f32.mxu1 %vm3127_vm6, %v3126_v15 }
 0x598   :  { %v950_v11 = vpop.permute.xlu1 %949 }
 0x599   :  { %vm952_vm9 = vcmp.eq.s32.totalorder %v950_v11, 1 }
 0x59a   :  { %v954_v23 = vsel %vm952_vm9, %v936_v20, %v938_v21 }
 0x59c   :  { %v962_v18 = vpop.permute.xlu1 %961 }
 0x59d   :  { %vm964_vm11 = vcmp.eq.s32.totalorder %v962_v18, 1 }
 0x59f   :  { %v947_v8 = vpop.permute.xlu0 %946 }
 0x5a0   :  { %vm951_vm7 = vcmp.eq.s32.totalorder %v947_v8, 1 }
 0x5a1   :  { %v953_v17 = vsel %vm951_vm7, %v935_v13, %v937_v14  ;;  %vm1266_vm7 = vcmp.eq.s32.totalorder %v3415_v33, 4294967295 }
 0x5a3   :  { %v959_v12 = vpop.permute.xlu0 %958 }
 0x5a4   :  { %vm963_vm8 = vcmp.eq.s32.totalorder %v959_v12, 1 }
 0x64b   :  { %v824_v6 = vpop.f32.mrb[2].mxu0 }
 0x64c   :  { %2962 = vtanh.f32 %v824_v6  ;;  %v2840_v7 = vpop.f32.mrb[3].mxu0 }
 0x64f   :  { %v929_v9 = vpop.f32.mrb[6].mxu1 }
 0x650   :  { %2964 = vtanh.f32 %v929_v9  ;;  %v2845_v10 = vpop.f32.mrb[7].mxu1 }
 0x656   :  { %v2963_v16 = vpop.eup %2962 }
 0x657   :  { %v965_v19 = vsel %vm963_vm8, %v2963_v16, %v953_v17  ;;  %vm1264_vm8 = vcmp.ge.s32.totalorder %v3415_v33, 0 }
 0x658   :  { %967 = vst.msk [vmem:[#allocation10 + $0x2] sm:$0x1] %vm641_vm4, %v965_v19 }
 0x65a   :  { %v2965_v22 = vpop.eup %2964 }
 0x65b   :  { %v966_v24 = vsel %vm964_vm11, %v2965_v22, %v954_v23  ;;  %v1269_v23 = vsel %vm1267_vm3, 1, %v3125_v1 }
 0x65c   :  { %968 = vst.msk [vmem:[#allocation10 + $0xa] sm:$0x1] %vm641_vm4, %v966_v24  ;;  %v1281_v24 = vsel %vm1265_vm5, 1, %v3125_v1 }
 0x65f   :  { %v973_v25 = vld [vmem:[#allocation10] sm:$0xff] }
 0x660   :  { %2847 = vmatpush3.msra.mxu0 %v973_v25  ;;  %v979_v27 = vmul.f32 %v2735_v26, %v973_v25  ;;  %v1268_v25 = vsel %vm1266_vm7, 1, %v3125_v1  ;;  %v1280_v26 = vsel %vm1264_vm8, 1, %v3125_v1 }
 0x661   :  { %2856 = vmatprep.subr.mxu0 %v3126_v15 }
 0x662   :  { %v980_v28 = vsel %vm90_vm0, %v979_v27, 0.0 }
 0x663   :  { %981 = vadd.xlane.f32.xlu0 %v980_v28  ;;  %v974_v29 = vld [vmem:[#allocation10 + $0x8] sm:$0xff] }
 0x664   :  { %2852 = vmatpush3.msra.mxu1 %v974_v29  ;;  %v987_v31 = vmul.f32 %v2736_v30, %v974_v29 }
 0x665   :  { %2861 = vmatprep.subr.mxu1 %v3126_v15 }
 0x666   :  { %v988_v32 = vsel %vm90_vm0, %v987_v31, 0.0 }
 0x667   :  { %989 = vadd.xlane.f32.xlu1 %v988_v32 }
 0x6f0   :  { %v982_v38 = vpop.xlane.xlu0 %981 }
 0x6f1   :  { %v1006_v39 = vsel %vm3425_vm14, %v982_v38, -1e+30 }
 0x6f2   :  { %v1008_v40 = vsel %vm355_vm10, %v1006_v39, -inf }
 0x6f3   :  { %v1009_v42 = vrot.slane %v1008_v40, 4 }
 0x6f4   :  { %v990_v43 = vpop.xlane.xlu1 %989 }
 0x6f5   :  { %v1010_v44 = vmax.f32 %v1008_v40, %v1009_v42  ;;  %v1007_v46 = vsel %vm3433_vm1, %v990_v43, -1e+30  ;;  %v1261_v42 = vld [vmem:[#allocation2 + $0xb] sm:$0x1]  ;;  %v1263_v43 = vld [vmem:[#allocation10 + $0xb] sm:$0x1] }
 0x6f6   :  { %v1015_v47 = vsel %vm355_vm10, %v1007_v46, -inf }
 0x6f7   :  { %v1011_v48 = vrot.slane %v1010_v44, 2  ;;  %v1016_v50 = vrot.slane %v1015_v47, 4 }
 0x6f9   :  { %v1012_v51 = vmax.f32 %v1010_v44, %v1011_v48  ;;  %v1017_v52 = vmax.f32 %v1015_v47, %v1016_v50  ;;  %v2739_v50 = vld [vmem:[#allocation3 + $0x4] ss:$0 sm:$0xff] }
 0x6fb   :  { %v1013_v45 = vrot.slane %v1012_v51, 1  ;;  %v1018_v53 = vrot.slane %v1017_v52, 2 }
 0x6fd   :  { %v1014_v54 = vmax.f32 %v1012_v51, %v1013_v45  ;;  %v1019_v55 = vmax.f32 %v1017_v52, %v1018_v53  ;;  %v2740_v53 = vld [vmem:[#allocation3 + $0xc] ss:$0 sm:$0xff] }
 0x6ff   :  { %v1022_v56 = vsub.f32 %v1006_v39, %v1014_v54  ;;  %v1020_v57 = vrot.slane %v1019_v55, 1 }
 0x701   :  { %v1024_v58 = vmul.f32 1.442695, %v1022_v56  ;;  %v1021_v59 = vmax.f32 %v1019_v55, %v1020_v57  ;;  %v3467_v56 = vld [vmem:[%s3688_s0 + $0x4] sm:$0x1] }
 0x702   :  { %v1319_v57 = vrot.slane %v3467_v56, %v3298_v49 }
 0x703   :  { %2966 = vpow2.f32 %v1024_v58  ;;  %v1023_v60 = vsub.f32 %v1007_v46, %v1021_v59  ;;  %v1295_v58 = vld [vmem:[%s3688_s0 + $0xc] sm:$0x1] }
 0x704   :  { %v1323_v59 = vrot.slane %v1295_v58, %v3298_v49  ;;  %vm1592_vm7 = vcmp.eq.s32.totalorder %v1295_v58, 4294967295  ;;  %vm1590_vm8 = vcmp.ge.s32.totalorder %v1295_v58, 0 }
 0x705   :  { %v1026_v61 = vmul.f32 1.442695, %v1023_v60  ;;  %v1587_v60 = vld [vmem:[#allocation10 + $0x4] sm:$0x1] }
 0x706   :  { %vm1325_vm3 = vcmp.ge.s32.totalorder %v3237_v2, %v1323_v59  ;;  %v1585_v59 = vld [vmem:[#allocation2 + $0x4] sm:$0x1] }
 0x707   :  { %2968 = vpow2.f32 %v1026_v61  ;;  %vm3485_vm5 = vmand %vm1325_vm3, %vm1326_vm15  ;;  %vm1651_vm3 = vcmp.lt.s32.totalorder %v3237_v2, 5 }
 0x70d   :  { %v2967_v62 = vpop.eup %2966 }
 0x70e   :  { %v1028_v63 = vsel %vm3425_vm14, %v2967_v62, 0.0  ;;  %vm1324_vm14 = vcmp.ge.s32.totalorder %v3237_v2, %v1319_v57 }
 0x70f   :  { %v1030_v0 = vsel %vm355_vm10, %v1028_v63, 0.0 }
 0x710   :  { %v1031_v3 = vrot.slane %v1030_v0, 4 }
 0x711   :  { %v2969_v4 = vpop.eup %2968 }
 0x712   :  { %v1032_v5 = vadd.f32 %v1031_v3, %v1030_v0  ;;  %v1029_v6 = vsel %vm3433_vm1, %v2969_v4, 0.0  ;;  %vm3477_vm1 = vmand %vm1324_vm14, %vm1326_vm15 }
 0x713   :  { %v1037_v7 = vsel %vm355_vm10, %v1029_v6, 0.0 }
 0x714   :  { %v1033_v8 = vrot.slane %v1032_v5, 2  ;;  %v1038_v9 = vrot.slane %v1037_v7, 4 }
 0x716   :  { %v1034_v10 = vadd.f32 %v1033_v8, %v1032_v5  ;;  %v1039_v11 = vadd.f32 %v1038_v9, %v1037_v7 }
 0x718   :  { %v1035_v12 = vrot.slane %v1034_v10, 1  ;;  %v1040_v13 = vrot.slane %v1039_v11, 2 }
 0x71a   :  { %v1036_v14 = vadd.f32 %v1035_v12, %v1034_v10  ;;  %v1041_v16 = vadd.f32 %v1040_v13, %v1039_v11 }
 0x71c   :  { %2970 = vrcp.f32 %v1036_v14  ;;  %v1042_v17 = vrot.slane %v1041_v16, 1 }
 0x71e   :  { %v1043_v18 = vadd.f32 %v1042_v17, %v1041_v16 }
 0x720   :  { %2972 = vrcp.f32 %v1043_v18 }
 0x726   :  { %v2971_v19 = vpop.eup %2970 }
 0x727   :  { %v1045_v20 = vmul.f32 %v2971_v19, %v1028_v63 }
 0x729   :  { %1048 = vxpose.xlu0.b32.start.end [1/1] (short) (narrow) %v1045_v20, 8 }
 0x72a   :  { %v2973_v21 = vpop.eup %2972 }
 0x72b   :  { %v1047_v22 = vmul.f32 %v2973_v21, %v1029_v6 }
 0x72d   :  { %1153 = vxpose.xlu1.b32.start.end [1/1] (short) (narrow) %v1047_v22, 8 }
 0x74b   :  { %1274 = vperm.xlu1 %2941, %v1269_v23  }
 0x74f   :  { %1286 = vperm.xlu1 %2941, %v1281_v24  }
 0x752   :  { %1271 = vperm.xlu0 %2940, %v1268_v25  }
 0x756   :  { %1283 = vperm.xlu0 %2940, %v1280_v26  }
 0x7a9   :  { %v1064_v27 = vpop.trf.xlu0 }
 0x7aa   :  { %2849 = vmatmul.mubr.msk.f32.vlgmr.msra.gmra.mrb[4].mxu0 %vm428_vm2, %v1064_v27 }
 0x7ab   :  { %2858 = vmatprep.mubr.msk.f32.mxu0 %vm3127_vm6, %v3126_v15 }
 0x7ad   :  { %v1169_v28 = vpop.trf.xlu1 }
 0x7ae   :  { %2854 = vmatmul.mubr.msk.f32.vlgmr.msra.gmra.mrb[8].mxu1 %vm428_vm2, %v1169_v28 }
 0x7af   :  { %2863 = vmatprep.mubr.msk.f32.mxu1 %vm3127_vm6, %v3126_v15 }
 0x7ca   :  { %v1275_v34 = vpop.permute.xlu1 %1274 }
 0x7cb   :  { %vm1277_vm12 = vcmp.eq.s32.totalorder %v1275_v34, 1 }
 0x7cc   :  { %v1279_v46 = vsel %vm1277_vm12, %v1261_v42, %v1263_v43 }
 0x7ce   :  { %v1287_v40 = vpop.permute.xlu1 %1286 }
 0x7cf   :  { %vm1289_vm13 = vcmp.eq.s32.totalorder %v1287_v40, 1 }
 0x7d1   :  { %v1272_v31 = vpop.permute.xlu0 %1271 }
 0x7d2   :  { %vm1276_vm9 = vcmp.eq.s32.totalorder %v1272_v31, 1 }
 0x7d3   :  { %v1278_v39 = vsel %vm1276_vm9, %v1260_v36, %v1262_v37  ;;  %vm1591_vm9 = vcmp.eq.s32.totalorder %v3467_v56, 4294967295 }
 0x7d5   :  { %v1284_v35 = vpop.permute.xlu0 %1283 }
 0x7d6   :  { %vm1288_vm11 = vcmp.eq.s32.totalorder %v1284_v35, 1 }
 0x87d   :  { %v1149_v29 = vpop.f32.mrb[4].mxu0 }
 0x87e   :  { %2974 = vtanh.f32 %v1149_v29  ;;  %v2850_v30 = vpop.f32.mrb[5].mxu0 }
 0x881   :  { %v1254_v32 = vpop.f32.mrb[8].mxu1 }
 0x882   :  { %2976 = vtanh.f32 %v1254_v32  ;;  %v2855_v33 = vpop.f32.mrb[9].mxu1 }
 0x888   :  { %v2975_v38 = vpop.eup %2974 }
 0x889   :  { %v1290_v41 = vsel %vm1288_vm11, %v2975_v38, %v1278_v39  ;;  %vm1589_vm11 = vcmp.ge.s32.totalorder %v3467_v56, 0 }
 0x88a   :  { %1292 = vst.msk [vmem:[#allocation10 + $0x3] sm:$0x1] %vm641_vm4, %v1290_v41 }
 0x88c   :  { %v2977_v44 = vpop.eup %2976 }
 0x88d   :  { %v1291_v47 = vsel %vm1289_vm13, %v2977_v44, %v1279_v46  ;;  %v1594_v46 = vsel %vm1592_vm7, 1, %v3125_v1 }
 0x88e   :  { %1293 = vst.msk [vmem:[#allocation10 + $0xb] sm:$0x1] %vm641_vm4, %v1291_v47  ;;  %v1606_v47 = vsel %vm1590_vm8, 1, %v3125_v1 }
 0x891   :  { %v1298_v48 = vld [vmem:[#allocation10] sm:$0xff] }
 0x892   :  { %2857 = vmatpush3.msra.mxu0 %v1298_v48  ;;  %v1304_v51 = vmul.f32 %v2739_v50, %v1298_v48  ;;  %v1593_v48 = vsel %vm1591_vm9, 1, %v3125_v1  ;;  %v1605_v50 = vsel %vm1589_vm11, 1, %v3125_v1 }
 0x893   :  { %2866 = vmatprep.subr.mxu0 %v3126_v15 }
 0x894   :  { %v1305_v52 = vsel %vm90_vm0, %v1304_v51, 0.0 }
 0x895   :  { %1306 = vadd.xlane.f32.xlu0 %v1305_v52  ;;  %v1299_v45 = vld [vmem:[#allocation10 + $0x8] sm:$0xff] }
 0x896   :  { %2862 = vmatpush3.msra.mxu1 %v1299_v45  ;;  %v1312_v54 = vmul.f32 %v2740_v53, %v1299_v45 }
 0x897   :  { %2871 = vmatprep.subr.mxu1 %v3126_v15 }
 0x898   :  { %v1313_v55 = vsel %vm90_vm0, %v1312_v54, 0.0 }
 0x899   :  { %1314 = vadd.xlane.f32.xlu1 %v1313_v55 }
 0x922   :  { %v1307_v61 = vpop.xlane.xlu0 %1306 }
 0x923   :  { %v1331_v62 = vsel %vm3477_vm1, %v1307_v61, -1e+30 }
 0x924   :  { %v1333_v63 = vsel %vm355_vm10, %v1331_v62, -inf }
 0x925   :  { %v1334_v3 = vrot.slane %v1333_v63, 4 }
 0x926   :  { %v1315_v4 = vpop.xlane.xlu1 %1314 }
 0x927   :  { %v1335_v5 = vmax.f32 %v1333_v63, %v1334_v3  ;;  %v1332_v6 = vsel %vm3485_vm5, %v1315_v4, -1e+30  ;;  %v1586_v3 = vld [vmem:[#allocation2 + $0xc] sm:$0x1]  ;;  %v1588_v4 = vld [vmem:[#allocation10 + $0xc] sm:$0x1] }
 0x928   :  { %v1340_v7 = vsel %vm355_vm10, %v1332_v6, -inf }
 0x929   :  { %v1336_v8 = vrot.slane %v1335_v5, 2  ;;  %v1341_v9 = vrot.slane %v1340_v7, 4 }
 0x92b   :  { %v1337_v10 = vmax.f32 %v1335_v5, %v1336_v8  ;;  %v1342_v11 = vmax.f32 %v1340_v7, %v1341_v9  ;;  %v2743_v9 = vld [vmem:[#allocation3 + $0x5] ss:$0 sm:$0xff] }
 0x92d   :  { %v1338_v12 = vrot.slane %v1337_v10, 1  ;;  %v1343_v13 = vrot.slane %v1342_v11, 2 }
 0x92f   :  { %v1339_v14 = vmax.f32 %v1337_v10, %v1338_v12  ;;  %v1344_v16 = vmax.f32 %v1342_v11, %v1343_v13  ;;  %v2744_v13 = vld [vmem:[#allocation3 + $0xd] ss:$0 sm:$0xff] }
 0x931   :  { %v1347_v17 = vsub.f32 %v1331_v62, %v1339_v14  ;;  %v1345_v18 = vrot.slane %v1344_v16, 1 }
 0x933   :  { %v1349_v19 = vmul.f32 1.442695, %v1347_v17  ;;  %v1346_v20 = vmax.f32 %v1344_v16, %v1345_v18  ;;  %v3519_v17 = vld [vmem:[%s3688_s0 + $0x5] sm:$0x1] }
 0x934   :  { %v1644_v18 = vrot.slane %v3519_v17, %v3298_v49 }
 0x935   :  { %2978 = vpow2.f32 %v1349_v19  ;;  %v1348_v21 = vsub.f32 %v1332_v6, %v1346_v20  ;;  %v1620_v19 = vld [vmem:[%s3688_s0 + $0xd] sm:$0x1] }
 0x936   :  { %v1648_v20 = vrot.slane %v1620_v19, %v3298_v49  ;;  %vm1917_vm9 = vcmp.eq.s32.totalorder %v1620_v19, 4294967295  ;;  %vm1915_vm11 = vcmp.ge.s32.totalorder %v1620_v19, 0 }
 0x937   :  { %v1351_v22 = vmul.f32 1.442695, %v1348_v21  ;;  %v1912_v21 = vld [vmem:[#allocation10 + $0x5] sm:$0x1] }
 0x938   :  { %vm1650_vm7 = vcmp.ge.s32.totalorder %v3237_v2, %v1648_v20  ;;  %v1910_v20 = vld [vmem:[#allocation2 + $0x5] sm:$0x1] }
 0x939   :  { %2980 = vpow2.f32 %v1351_v22  ;;  %vm3537_vm8 = vmand %vm1650_vm7, %vm1651_vm3  ;;  %vm1976_vm7 = vcmp.lt.s32.totalorder %v3237_v2, 6 }
 0x93f   :  { %v2979_v23 = vpop.eup %2978 }
 0x940   :  { %v1353_v24 = vsel %vm3477_vm1, %v2979_v23, 0.0  ;;  %vm1649_vm1 = vcmp.ge.s32.totalorder %v3237_v2, %v1644_v18 }
 0x941   :  { %v1355_v25 = vsel %vm355_vm10, %v1353_v24, 0.0 }
 0x942   :  { %v1356_v26 = vrot.slane %v1355_v25, 4 }
 0x943   :  { %v2981_v27 = vpop.eup %2980 }
 0x944   :  { %v1357_v28 = vadd.f32 %v1356_v26, %v1355_v25  ;;  %v1354_v29 = vsel %vm3485_vm5, %v2981_v27, 0.0  ;;  %vm3529_vm5 = vmand %vm1649_vm1, %vm1651_vm3 }
 0x945   :  { %v1362_v30 = vsel %vm355_vm10, %v1354_v29, 0.0 }
 0x946   :  { %v1358_v31 = vrot.slane %v1357_v28, 2  ;;  %v1363_v32 = vrot.slane %v1362_v30, 4 }
 0x948   :  { %v1359_v33 = vadd.f32 %v1358_v31, %v1357_v28  ;;  %v1364_v34 = vadd.f32 %v1363_v32, %v1362_v30 }
 0x94a   :  { %v1360_v35 = vrot.slane %v1359_v33, 1  ;;  %v1365_v36 = vrot.slane %v1364_v34, 2 }
 0x94c   :  { %v1361_v37 = vadd.f32 %v1360_v35, %v1359_v33  ;;  %v1366_v38 = vadd.f32 %v1365_v36, %v1364_v34 }
 0x94e   :  { %2982 = vrcp.f32 %v1361_v37  ;;  %v1367_v39 = vrot.slane %v1366_v38, 1 }
 0x950   :  { %v1368_v40 = vadd.f32 %v1367_v39, %v1366_v38 }
 0x952   :  { %2984 = vrcp.f32 %v1368_v40 }
 0x958   :  { %v2983_v41 = vpop.eup %2982 }
 0x959   :  { %v1370_v42 = vmul.f32 %v2983_v41, %v1353_v24 }
 0x95b   :  { %1373 = vxpose.xlu0.b32.start.end [1/1] (short) (narrow) %v1370_v42, 8 }
 0x95c   :  { %v2985_v43 = vpop.eup %2984 }
 0x95d   :  { %v1372_v44 = vmul.f32 %v2985_v43, %v1354_v29 }
 0x95f   :  { %1478 = vxpose.xlu1.b32.start.end [1/1] (short) (narrow) %v1372_v44, 8 }
 0x97d   :  { %1599 = vperm.xlu1 %2941, %v1594_v46  }
 0x981   :  { %1611 = vperm.xlu1 %2941, %v1606_v47  }
 0x984   :  { %1596 = vperm.xlu0 %2940, %v1593_v48  }
 0x988   :  { %1608 = vperm.xlu0 %2940, %v1605_v50  }
 0x9db   :  { %v1389_v51 = vpop.trf.xlu0 }
 0x9dc   :  { %2859 = vmatmul.mubr.msk.f32.vlgmr.msra.gmra.mrb[6].mxu0 %vm428_vm2, %v1389_v51 }
 0x9dd   :  { %2868 = vmatprep.mubr.msk.f32.mxu0 %vm3127_vm6, %v3126_v15 }
 0x9df   :  { %v1494_v52 = vpop.trf.xlu1 }
 0x9e0   :  { %2864 = vmatmul.mubr.msk.f32.vlgmr.msra.gmra.mrb[10].mxu1 %vm428_vm2, %v1494_v52 }
 0x9e1   :  { %2873 = vmatprep.mubr.msk.f32.mxu1 %vm3127_vm6, %v3126_v15 }
 0x9fc   :  { %v1600_v57 = vpop.permute.xlu1 %1599 }
 0x9fd   :  { %vm1602_vm14 = vcmp.eq.s32.totalorder %v1600_v57, 1 }
 0x9fe   :  { %v1604_v6 = vsel %vm1602_vm14, %v1586_v3, %v1588_v4 }
 0xa00   :  { %v1612_v63 = vpop.permute.xlu1 %1611 }
 0xa01   :  { %vm1614_vm15 = vcmp.eq.s32.totalorder %v1612_v63, 1 }
 0xa03   :  { %v1597_v54 = vpop.permute.xlu0 %1596 }
 0xa04   :  { %vm1601_vm12 = vcmp.eq.s32.totalorder %v1597_v54, 1 }
 0xa05   :  { %v1603_v62 = vsel %vm1601_vm12, %v1585_v59, %v1587_v60  ;;  %vm1916_vm12 = vcmp.eq.s32.totalorder %v3519_v17, 4294967295 }
 0xa07   :  { %v1609_v58 = vpop.permute.xlu0 %1608 }
 0xa08   :  { %vm1613_vm13 = vcmp.eq.s32.totalorder %v1609_v58, 1 }
 0xaaf   :  { %v1474_v45 = vpop.f32.mrb[6].mxu0 }
 0xab0   :  { %2986 = vtanh.f32 %v1474_v45  ;;  %v2860_v53 = vpop.f32.mrb[7].mxu0 }
 0xab3   :  { %v1579_v55 = vpop.f32.mrb[10].mxu1 }
 0xab4   :  { %2988 = vtanh.f32 %v1579_v55  ;;  %v2865_v56 = vpop.f32.mrb[11].mxu1 }
 0xaba   :  { %v2987_v61 = vpop.eup %2986 }
 0xabb   :  { %v1615_v0 = vsel %vm1613_vm13, %v2987_v61, %v1603_v62  ;;  %vm1914_vm13 = vcmp.ge.s32.totalorder %v3519_v17, 0 }
 0xabc   :  { %1617 = vst.msk [vmem:[#allocation10 + $0x4] sm:$0x1] %vm641_vm4, %v1615_v0 }
 0xabe   :  { %v2989_v5 = vpop.eup %2988 }
 0xabf   :  { %v1616_v7 = vsel %vm1614_vm15, %v2989_v5, %v1604_v6  ;;  %v1919_v6 = vsel %vm1917_vm9, 1, %v3125_v1 }
 0xac0   :  { %1618 = vst.msk [vmem:[#allocation10 + $0xc] sm:$0x1] %vm641_vm4, %v1616_v7  ;;  %v1931_v7 = vsel %vm1915_vm11, 1, %v3125_v1 }
 0xac3   :  { %v1623_v8 = vld [vmem:[#allocation10] sm:$0xff] }
 0xac4   :  { %2867 = vmatpush3.msra.mxu0 %v1623_v8  ;;  %v1629_v10 = vmul.f32 %v2743_v9, %v1623_v8  ;;  %v1918_v8 = vsel %vm1916_vm12, 1, %v3125_v1  ;;  %v1930_v9 = vsel %vm1914_vm13, 1, %v3125_v1 }
 0xac5   :  { %2876 = vmatprep.subr.mxu0 %v3126_v15 }
 0xac6   :  { %v1630_v11 = vsel %vm90_vm0, %v1629_v10, 0.0 }
 0xac7   :  { %1631 = vadd.xlane.f32.xlu0 %v1630_v11  ;;  %v1624_v12 = vld [vmem:[#allocation10 + $0x8] sm:$0xff] }
 0xac8   :  { %2872 = vmatpush3.msra.mxu1 %v1624_v12  ;;  %v1637_v14 = vmul.f32 %v2744_v13, %v1624_v12 }
 0xac9   :  { %2881 = vmatprep.subr.mxu1 %v3126_v15 }
 0xaca   :  { %v1638_v16 = vsel %vm90_vm0, %v1637_v14, 0.0 }
 0xacb   :  { %1639 = vadd.xlane.f32.xlu1 %v1638_v16 }
 0xb54   :  { %v1632_v22 = vpop.xlane.xlu0 %1631 }
 0xb55   :  { %v1656_v23 = vsel %vm3529_vm5, %v1632_v22, -1e+30 }
 0xb56   :  { %v1658_v24 = vsel %vm355_vm10, %v1656_v23, -inf }
 0xb57   :  { %v1659_v26 = vrot.slane %v1658_v24, 4 }
 0xb58   :  { %v1640_v27 = vpop.xlane.xlu1 %1639 }
 0xb59   :  { %v1660_v28 = vmax.f32 %v1658_v24, %v1659_v26  ;;  %v1657_v29 = vsel %vm3537_vm8, %v1640_v27, -1e+30  ;;  %v1911_v26 = vld [vmem:[#allocation2 + $0xd] sm:$0x1]  ;;  %v1913_v27 = vld [vmem:[#allocation10 + $0xd] sm:$0x1] }
 0xb5a   :  { %v1665_v30 = vsel %vm355_vm10, %v1657_v29, -inf }
 0xb5b   :  { %v1661_v31 = vrot.slane %v1660_v28, 2  ;;  %v1666_v32 = vrot.slane %v1665_v30, 4 }
 0xb5d   :  { %v1662_v33 = vmax.f32 %v1660_v28, %v1661_v31  ;;  %v1667_v34 = vmax.f32 %v1665_v30, %v1666_v32  ;;  %v2747_v32 = vld [vmem:[#allocation3 + $0x6] ss:$0 sm:$0xff] }
 0xb5f   :  { %v1663_v35 = vrot.slane %v1662_v33, 1  ;;  %v1668_v36 = vrot.slane %v1667_v34, 2 }
 0xb61   :  { %v1664_v37 = vmax.f32 %v1662_v33, %v1663_v35  ;;  %v1669_v38 = vmax.f32 %v1667_v34, %v1668_v36  ;;  %v2748_v36 = vld [vmem:[#allocation3 + $0xe] ss:$0 sm:$0xff] }
 0xb63   :  { %v1672_v39 = vsub.f32 %v1656_v23, %v1664_v37  ;;  %v1670_v40 = vrot.slane %v1669_v38, 1 }
 0xb65   :  { %v1674_v41 = vmul.f32 1.442695, %v1672_v39  ;;  %v1671_v42 = vmax.f32 %v1669_v38, %v1670_v40  ;;  %v3571_v39 = vld [vmem:[%s3688_s0 + $0x6] sm:$0x1] }
 0xb66   :  { %v1969_v40 = vrot.slane %v3571_v39, %v3298_v49 }
 0xb67   :  { %2990 = vpow2.f32 %v1674_v41  ;;  %v1673_v43 = vsub.f32 %v1657_v29, %v1671_v42  ;;  %v1945_v41 = vld [vmem:[%s3688_s0 + $0xe] sm:$0x1] }
 0xb68   :  { %v1973_v42 = vrot.slane %v1945_v41, %v3298_v49  ;;  %vm2242_vm12 = vcmp.eq.s32.totalorder %v1945_v41, 4294967295  ;;  %vm2240_vm13 = vcmp.ge.s32.totalorder %v1945_v41, 0 }
 0xb69   :  { %v1676_v44 = vmul.f32 1.442695, %v1673_v43  ;;  %v2237_v43 = vld [vmem:[#allocation10 + $0x6] sm:$0x1] }
 0xb6a   :  { %vm1975_vm9 = vcmp.ge.s32.totalorder %v3237_v2, %v1973_v42  ;;  %v2235_v42 = vld [vmem:[#allocation2 + $0x6] sm:$0x1] }
 0xb6b   :  { %2992 = vpow2.f32 %v1676_v44  ;;  %vm3589_vm11 = vmand %vm1975_vm9, %vm1976_vm7 }
 0xb71   :  { %v2991_v46 = vpop.eup %2990 }
 0xb72   :  { %v1678_v47 = vsel %vm3529_vm5, %v2991_v46, 0.0  ;;  %vm1974_vm5 = vcmp.ge.s32.totalorder %v3237_v2, %v1969_v40 }
 0xb73   :  { %v1680_v48 = vsel %vm355_vm10, %v1678_v47, 0.0 }
 0xb74   :  { %v1681_v50 = vrot.slane %v1680_v48, 4 }
 0xb75   :  { %v2993_v51 = vpop.eup %2992 }
 0xb76   :  { %v1682_v52 = vadd.f32 %v1681_v50, %v1680_v48  ;;  %v1679_v45 = vsel %vm3537_vm8, %v2993_v51, 0.0  ;;  %vm3581_vm8 = vmand %vm1974_vm5, %vm1976_vm7 }
 0xb77   :  { %v1687_v53 = vsel %vm355_vm10, %v1679_v45, 0.0 }
 0xb78   :  { %v1683_v54 = vrot.slane %v1682_v52, 2  ;;  %v1688_v55 = vrot.slane %v1687_v53, 4 }
 0xb7a   :  { %v1684_v56 = vadd.f32 %v1683_v54, %v1682_v52  ;;  %v1689_v57 = vadd.f32 %v1688_v55, %v1687_v53 }
 0xb7c   :  { %v1685_v58 = vrot.slane %v1684_v56, 1  ;;  %v1690_v59 = vrot.slane %v1689_v57, 2 }
 0xb7e   :  { %v1686_v60 = vadd.f32 %v1685_v58, %v1684_v56  ;;  %v1691_v61 = vadd.f32 %v1690_v59, %v1689_v57 }
 0xb80   :  { %2994 = vrcp.f32 %v1686_v60  ;;  %v1692_v62 = vrot.slane %v1691_v61, 1 }
 0xb82   :  { %v1693_v63 = vadd.f32 %v1692_v62, %v1691_v61 }
 0xb84   :  { %2996 = vrcp.f32 %v1693_v63 }
 0xb8a   :  { %v2995_v0 = vpop.eup %2994 }
 0xb8b   :  { %v1695_v3 = vmul.f32 %v2995_v0, %v1678_v47 }
 0xb8d   :  { %1698 = vxpose.xlu0.b32.start.end [1/1] (short) (narrow) %v1695_v3, 8 }
 0xb8e   :  { %v2997_v4 = vpop.eup %2996 }
 0xb8f   :  { %v1697_v5 = vmul.f32 %v2997_v4, %v1679_v45 }
 0xb91   :  { %1803 = vxpose.xlu1.b32.start.end [1/1] (short) (narrow) %v1697_v5, 8 }
 0xbaf   :  { %1924 = vperm.xlu1 %2941, %v1919_v6  }
 0xbb3   :  { %1936 = vperm.xlu1 %2941, %v1931_v7  }
 0xbb6   :  { %1921 = vperm.xlu0 %2940, %v1918_v8  }
 0xbba   :  { %1933 = vperm.xlu0 %2940, %v1930_v9  }
 0xc0d   :  { %v1714_v10 = vpop.trf.xlu0 }
 0xc0e   :  { %2869 = vmatmul.mubr.msk.f32.vlgmr.msra.gmra.mrb[8].mxu0 %vm428_vm2, %v1714_v10 }
 0xc0f   :  { %2878 = vmatprep.mubr.msk.f32.mxu0 %vm3127_vm6, %v3126_v15 }
 0xc11   :  { %v1819_v11 = vpop.trf.xlu1 }
 0xc12   :  { %2874 = vmatmul.mubr.msk.f32.vlgmr.msra.gmra.mrb[12].mxu1 %vm428_vm2, %v1819_v11 }
 0xc13   :  { %2883 = vmatprep.mubr.msk.f32.mxu1 %vm3127_vm6, %v3126_v15 }
 0xc2e   :  { %v1925_v18 = vpop.permute.xlu1 %1924 }
 0xc2f   :  { %vm1927_vm1 = vcmp.eq.s32.totalorder %v1925_v18, 1 }
 0xc30   :  { %v1929_v29 = vsel %vm1927_vm1, %v1911_v26, %v1913_v27 }
 0xc32   :  { %v1937_v24 = vpop.permute.xlu1 %1936 }
 0xc33   :  { %vm1939_vm3 = vcmp.eq.s32.totalorder %v1937_v24, 1 }
 0xc35   :  { %v1922_v14 = vpop.permute.xlu0 %1921 }
 0xc36   :  { %vm1926_vm14 = vcmp.eq.s32.totalorder %v1922_v14, 1 }
 0xc37   :  { %v1928_v23 = vsel %vm1926_vm14, %v1910_v20, %v1912_v21  ;;  %vm2241_vm14 = vcmp.eq.s32.totalorder %v3571_v39, 4294967295 }
 0xc39   :  { %v1934_v19 = vpop.permute.xlu0 %1933 }
 0xc3a   :  { %vm1938_vm15 = vcmp.eq.s32.totalorder %v1934_v19, 1 }
 0xce1   :  { %v1799_v12 = vpop.f32.mrb[8].mxu0 }
 0xce2   :  { %2998 = vtanh.f32 %v1799_v12  ;;  %v2870_v13 = vpop.f32.mrb[9].mxu0 }
 0xce5   :  { %v1904_v16 = vpop.f32.mrb[12].mxu1 }
 0xce6   :  { %3000 = vtanh.f32 %v1904_v16  ;;  %v2875_v17 = vpop.f32.mrb[13].mxu1 }
 0xcec   :  { %v2999_v22 = vpop.eup %2998 }
 0xced   :  { %v1940_v25 = vsel %vm1938_vm15, %v2999_v22, %v1928_v23  ;;  %vm2239_vm15 = vcmp.ge.s32.totalorder %v3571_v39, 0 }
 0xcee   :  { %1942 = vst.msk [vmem:[#allocation10 + $0x5] sm:$0x1] %vm641_vm4, %v1940_v25 }
 0xcf0   :  { %v3001_v28 = vpop.eup %3000 }
 0xcf1   :  { %v1941_v30 = vsel %vm1939_vm3, %v3001_v28, %v1929_v29  ;;  %v2244_v29 = vsel %vm2242_vm12, 1, %v3125_v1 }
 0xcf2   :  { %1943 = vst.msk [vmem:[#allocation10 + $0xd] sm:$0x1] %vm641_vm4, %v1941_v30  ;;  %v2256_v30 = vsel %vm2240_vm13, 1, %v3125_v1 }
 0xcf5   :  { %v1948_v31 = vld [vmem:[#allocation10] sm:$0xff] }
 0xcf6   :  { %2877 = vmatpush3.msra.mxu0 %v1948_v31  ;;  %v1954_v33 = vmul.f32 %v2747_v32, %v1948_v31  ;;  %v2243_v31 = vsel %vm2241_vm14, 1, %v3125_v1  ;;  %v2255_v32 = vsel %vm2239_vm15, 1, %v3125_v1 }
 0xcf7   :  { %2886 = vmatprep.subr.mxu0 %v3126_v15 }
 0xcf8   :  { %v1955_v34 = vsel %vm90_vm0, %v1954_v33, 0.0 }
 0xcf9   :  { %1956 = vadd.xlane.f32.xlu0 %v1955_v34  ;;  %v1949_v35 = vld [vmem:[#allocation10 + $0x8] sm:$0xff] }
 0xcfa   :  { %2882 = vmatpush3.msra.mxu1 %v1949_v35  ;;  %v1962_v37 = vmul.f32 %v2748_v36, %v1949_v35 }
 0xcfb   :  { %2891 = vmatprep.subr.mxu1 %v3126_v15 }
 0xcfc   :  { %v1963_v38 = vsel %vm90_vm0, %v1962_v37, 0.0 }
 0xcfd   :  { %1964 = vadd.xlane.f32.xlu1 %v1963_v38 }
 0xd86   :  { %v1957_v44 = vpop.xlane.xlu0 %1956 }
 0xd87   :  { %v1981_v46 = vsel %vm3581_vm8, %v1957_v44, -1e+30 }
 0xd88   :  { %v1983_v47 = vsel %vm355_vm10, %v1981_v46, -inf }
 0xd89   :  { %v1984_v50 = vrot.slane %v1983_v47, 4 }
 0xd8a   :  { %v1965_v51 = vpop.xlane.xlu1 %1964 }
 0xd8b   :  { %v1985_v52 = vmax.f32 %v1983_v47, %v1984_v50  ;;  %v1982_v45 = vsel %vm3589_vm11, %v1965_v51, -1e+30  ;;  %v2238_v50 = vld [vmem:[#allocation10 + $0xe] sm:$0x1] }
 0xd8c   :  { %v1990_v53 = vsel %vm355_vm10, %v1982_v45, -inf }
 0xd8d   :  { %v1986_v54 = vrot.slane %v1985_v52, 2  ;;  %v1991_v55 = vrot.slane %v1990_v53, 4 }
 0xd8f   :  { %v1987_v56 = vmax.f32 %v1985_v52, %v1986_v54  ;;  %v1992_v57 = vmax.f32 %v1990_v53, %v1991_v55  ;;  %v2751_v54 = vld [vmem:[#allocation3 + $0x7] ss:$0 sm:$0xff] }
 0xd91   :  { %v1988_v58 = vrot.slane %v1987_v56, 1  ;;  %v1993_v59 = vrot.slane %v1992_v57, 2 }
 0xd93   :  { %v1989_v60 = vmax.f32 %v1987_v56, %v1988_v58  ;;  %v1994_v61 = vmax.f32 %v1992_v57, %v1993_v59  ;;  %v2752_v58 = vld [vmem:[#allocation3 + $0xf] ss:$0 sm:$0xff] }
 0xd95   :  { %v1997_v62 = vsub.f32 %v1981_v46, %v1989_v60  ;;  %v1995_v63 = vrot.slane %v1994_v61, 1 }
 0xd97   :  { %v1999_v0 = vmul.f32 1.442695, %v1997_v62  ;;  %v1996_v3 = vmax.f32 %v1994_v61, %v1995_v63  ;;  %v2598_v61 = vld [vmem:[#allocation9] sm:$0xff]  ;;  %v2599_v62 = vld [vmem:[#allocation9 + $0x8] sm:$0xff] }
 0xd98   :  { %v3618_v63 = vpack.c.bf16 %v2599_v62, %v2598_v61  ;;  %v2595_v61 = vld [vmem:[#allocation2 + $0x8] sm:$0xff] }
 0xd99   :  { %3002 = vpow2.f32 %v1999_v0  ;;  %v1998_v4 = vsub.f32 %v1982_v45, %v1996_v3  ;;  %v3624_v0 = vld [vmem:[%s3688_s0 + $0x7] sm:$0x1] }
 0xd9a   :  { %v2294_v3 = vrot.slane %v3624_v0, %v3298_v49  ;;  %vm2566_vm14 = vcmp.eq.s32.totalorder %v3624_v0, 4294967295  ;;  %vm2564_vm15 = vcmp.ge.s32.totalorder %v3624_v0, 0 }
 0xd9b   :  { %v2001_v5 = vmul.f32 1.442695, %v1998_v4  ;;  %v2270_v4 = vld [vmem:[%s3688_s0 + $0xf] sm:$0x1] }
 0xd9c   :  { %vm2299_vm7 = vcmp.ge.s32.totalorder %v3237_v2, %v2294_v3  ;;  %vm2567_vm13 = vcmp.eq.s32.totalorder %v2270_v4, 4294967295 }
 0xd9d   :  { %3004 = vpow2.f32 %v2001_v5  ;;  %v2298_v5 = vrot.slane %v2270_v4, %v3298_v49 }
 0xda3   :  { %v3003_v6 = vpop.eup %3002 }
 0xda4   :  { %v2003_v7 = vsel %vm3581_vm8, %v3003_v6, 0.0  ;;  %vm2301_vm8 = vcmp.lt.s32.totalorder %v3237_v2, 7 }
 0xda5   :  { %v2005_v8 = vsel %vm355_vm10, %v2003_v7, 0.0  ;;  %vm3634_vm9 = vmand %vm2299_vm7, %vm2301_vm8 }
 0xda6   :  { %v2006_v9 = vrot.slane %v2005_v8, 4 }
 0xda7   :  { %v3005_v10 = vpop.eup %3004 }
 0xda8   :  { %v2007_v11 = vadd.f32 %v2006_v9, %v2005_v8  ;;  %v2004_v12 = vsel %vm3589_vm11, %v3005_v10, 0.0  ;;  %vm2300_vm11 = vcmp.ge.s32.totalorder %v3237_v2, %v2298_v5 }
 0xda9   :  { %v2012_v13 = vsel %vm355_vm10, %v2004_v12, 0.0  ;;  %vm3642_vm12 = vmand %vm2300_vm11, %vm2301_vm8 }
 0xdaa   :  { %v2008_v14 = vrot.slane %v2007_v11, 2  ;;  %v2013_v16 = vrot.slane %v2012_v13, 4 }
 0xdac   :  { %v2009_v17 = vadd.f32 %v2008_v14, %v2007_v11  ;;  %v2014_v18 = vadd.f32 %v2013_v16, %v2012_v13 }
 0xdae   :  { %v2010_v19 = vrot.slane %v2009_v17, 1  ;;  %v2015_v20 = vrot.slane %v2014_v18, 2 }
 0xdb0   :  { %v2011_v21 = vadd.f32 %v2010_v19, %v2009_v17  ;;  %v2016_v22 = vadd.f32 %v2015_v20, %v2014_v18 }
 0xdb2   :  { %3006 = vrcp.f32 %v2011_v21  ;;  %v2017_v23 = vrot.slane %v2016_v22, 1 }
 0xdb4   :  { %v2018_v24 = vadd.f32 %v2017_v23, %v2016_v22 }
 0xdb6   :  { %3008 = vrcp.f32 %v2018_v24 }
 0xdbc   :  { %v3007_v25 = vpop.eup %3006 }
 0xdbd   :  { %v2020_v26 = vmul.f32 %v3007_v25, %v2003_v7 }
 0xdbf   :  { %2023 = vxpose.xlu0.b32.start.end [1/1] (short) (narrow) %v2020_v26, 8 }
 0xdc0   :  { %v3009_v27 = vpop.eup %3008 }
 0xdc1   :  { %v2022_v28 = vmul.f32 %v3009_v27, %v2004_v12 }
 0xdc3   :  { %2128 = vxpose.xlu1.b32.start.end [1/1] (short) (narrow) %v2022_v28, 8 }
 0xde1   :  { %2249 = vperm.xlu1 %2941, %v2244_v29  }
 0xde5   :  { %2261 = vperm.xlu1 %2941, %v2256_v30  }
 0xde8   :  { %2246 = vperm.xlu0 %2940, %v2243_v31  }
 0xdec   :  { %2258 = vperm.xlu0 %2940, %v2255_v32  }
 0xe3f   :  { %v2039_v33 = vpop.trf.xlu0 }
 0xe40   :  { %2879 = vmatmul.mubr.msk.f32.vlgmr.msra.gmra.mrb[10].mxu0 %vm428_vm2, %v2039_v33 }
 0xe41   :  { %2888 = vmatprep.mubr.msk.f32.mxu0 %vm3127_vm6, %v3126_v15 }
 0xe43   :  { %v2144_v34 = vpop.trf.xlu1 }
 0xe44   :  { %2884 = vmatmul.mubr.msk.f32.vlgmr.msra.gmra.mrb[14].mxu1 %vm428_vm2, %v2144_v34 }
 0xe45   :  { %2893 = vmatprep.mubr.msk.f32.mxu1 %vm3127_vm6, %v3126_v15  ;;  %v2236_v15 = vld [vmem:[#allocation2 + $0xe] sm:$0x1] }
 0xe60   :  { %v2250_v40 = vpop.permute.xlu1 %2249 }
 0xe61   :  { %vm2252_vm5 = vcmp.eq.s32.totalorder %v2250_v40, 1 }
 0xe62   :  { %v2254_v52 = vsel %vm2252_vm5, %v2236_v15, %v2238_v50 }
 0xe64   :  { %v2262_v47 = vpop.permute.xlu1 %2261 }
 0xe65   :  { %vm2264_vm6 = vcmp.eq.s32.totalorder %v2262_v47, 1 }
 0xe67   :  { %v2247_v37 = vpop.permute.xlu0 %2246 }
 0xe68   :  { %vm2251_vm1 = vcmp.eq.s32.totalorder %v2247_v37, 1 }
 0xe69   :  { %v2253_v46 = vsel %vm2251_vm1, %v2235_v42, %v2237_v43 }
 0xe6b   :  { %v2259_v41 = vpop.permute.xlu0 %2258 }
 0xe6c   :  { %vm2263_vm3 = vcmp.eq.s32.totalorder %v2259_v41, 1 }
 0xf13   :  { %v2124_v35 = vpop.f32.mrb[10].mxu0 }
 0xf14   :  { %3010 = vtanh.f32 %v2124_v35  ;;  %v2880_v36 = vpop.f32.mrb[11].mxu0 }
 0xf17   :  { %v2229_v38 = vpop.f32.mrb[14].mxu1 }
 0xf18   :  { %3012 = vtanh.f32 %v2229_v38  ;;  %v2885_v39 = vpop.f32.mrb[15].mxu1 }
 0xf1e   :  { %v3011_v44 = vpop.eup %3010 }
 0xf1f   :  { %v2265_v48 = vsel %vm2263_vm3, %v3011_v44, %v2253_v46 }
 0xf20   :  { %2267 = vst.msk [vmem:[#allocation10 + $0x6] sm:$0x1] %vm641_vm4, %v2265_v48 }
 0xf22   :  { %v3013_v51 = vpop.eup %3012 }
 0xf23   :  { %v2266_v45 = vsel %vm2264_vm6, %v3013_v51, %v2254_v52  ;;  %v2569_v52 = vsel %vm2567_vm13, 1, %v3125_v1 }
 0xf24   :  { %2268 = vst.msk [vmem:[#allocation10 + $0xe] sm:$0x1] %vm641_vm4, %v2266_v45 }
 0xf27   :  { %v2273_v53 = vld [vmem:[#allocation10] sm:$0xff] }
 0xf28   :  { %2887 = vmatpush3.msra.mxu0 %v2273_v53  ;;  %v2279_v55 = vmul.f32 %v2751_v54, %v2273_v53  ;;  %v2568_v53 = vsel %vm2566_vm14, 1, %v3125_v1  ;;  %v2580_v54 = vsel %vm2564_vm15, 1, %v3125_v1 }
 0xf29   :  { %2924 = vmatprep.subr.bf16.mxu0 %v3618_v63 }
 0xf2a   :  { %v2280_v56 = vsel %vm90_vm0, %v2279_v55, 0.0  ;;  %v2600_v55 = vld [vmem:[#allocation9 + $0x10] sm:$0xff] }
 0xf2b   :  { %2281 = vadd.xlane.f32.xlu0 %v2280_v56  ;;  %v2274_v57 = vld [vmem:[#allocation10 + $0x8] sm:$0xff]  ;;  %v2601_v56 = vld [vmem:[#allocation9 + $0x18] sm:$0xff] }
 0xf2c   :  { %2892 = vmatpush3.msra.mxu1 %v2274_v57  ;;  %v2287_v59 = vmul.f32 %v2752_v58, %v2274_v57  ;;  %v2927_v57 = vpack.c.bf16 %v2601_v56, %v2600_v55 }
 0xf2e   :  { %v2288_v60 = vsel %vm90_vm0, %v2287_v59, 0.0  ;;  %v2594_v59 = vld [vmem:[#allocation2] sm:$0xff] }
 0xf2f   :  { %2289 = vadd.xlane.f32.xlu1 %v2288_v60 }
 0xfb8   :  { %v2282_v7 = vpop.xlane.xlu0 %2281 }
 0xfb9   :  { %v2306_v8 = vsel %vm3634_vm9, %v2282_v7, -1e+30 }
 0xfba   :  { %v2308_v9 = vsel %vm355_vm10, %v2306_v8, -inf }
 0xfbb   :  { %v2309_v11 = vrot.slane %v2308_v9, 4 }
 0xfbc   :  { %v2290_v12 = vpop.xlane.xlu1 %2289 }
 0xfbd   :  { %v2310_v13 = vmax.f32 %v2308_v9, %v2309_v11  ;;  %v2307_v49 = vsel %vm3642_vm12, %v2290_v12, -1e+30  ;;  %v2562_v9 = vld [vmem:[#allocation10 + $0x7] sm:$0x1] }
 0xfbe   :  { %v2315_v14 = vsel %vm355_vm10, %v2307_v49, -inf }
 0xfbf   :  { %v2311_v16 = vrot.slane %v2310_v13, 2  ;;  %v2316_v2 = vrot.slane %v2315_v14, 4 }
 0xfc1   :  { %v2312_v17 = vmax.f32 %v2310_v13, %v2311_v16  ;;  %v2317_v18 = vmax.f32 %v2315_v14, %v2316_v2  ;;  %v2563_v14 = vld [vmem:[#allocation10 + $0xf] sm:$0x1] }
 0xfc3   :  { %v2313_v19 = vrot.slane %v2312_v17, 1  ;;  %v2318_v20 = vrot.slane %v2317_v18, 2 }
 0xfc5   :  { %v2314_v21 = vmax.f32 %v2312_v17, %v2313_v19  ;;  %v2319_v22 = vmax.f32 %v2317_v18, %v2318_v20  ;;  %v2755_v18 = vld [vmem:[%s3697_s9] ss:$0 sm:$0xff]  ;;  %s3092_s9 = scalar_lea.vmem %s2704_s29, 256 }
 0xfc6   :  { %p3093_p10 = scmp.ne.s32.totalorder %s2704_s29, %s3092_s9  ;;  %p3098_p12 = scmp.lt.s32.totalorder %s3092_s9, %s3092_s9 }
 0xfc7   :  { %v2322_v23 = vsub.f32 %v2306_v8, %v2314_v21  ;;  %v2320_v24 = vrot.slane %v2319_v22, 1  ;;  %v2560_v8 = vld [vmem:[#allocation2 + $0x7] sm:$0x1] }
 0xfc8   :  { %p3099_p13 = por %p3098_p12, %p3097_p11 }
 0xfc9   :  { %v2324_v25 = vmul.f32 1.442695, %v2322_v23  ;;  %v2321_v26 = vmax.f32 %v2319_v22, %v2320_v24 }
 0xfca   :  { %p3100_p0 = pnand %p3099_p13, %p3093_p10 }
 0xfcb   :  { %3014 = vpow2.f32 %v2324_v25  ;;  %v2323_v27 = vsub.f32 %v2307_v49, %v2321_v26  ;;  %v2561_v49 = vld [vmem:[#allocation2 + $0xf] sm:$0x1] }
 0xfcd   :  { %v2326_v28 = vmul.f32 1.442695, %v2323_v27 }
 0xfcf   :  { %3016 = vpow2.f32 %v2326_v28 }
 0xfd5   :  { %v3015_v29 = vpop.eup %3014 }
 0xfd6   :  { %v2328_v30 = vsel %vm3634_vm9, %v3015_v29, 0.0 }
 0xfd7   :  { %v2330_v31 = vsel %vm355_vm10, %v2328_v30, 0.0 }
 0xfd8   :  { %v2331_v32 = vrot.slane %v2330_v31, 4 }
 0xfd9   :  { %v3017_v33 = vpop.eup %3016 }
 0xfda   :  { %v2332_v34 = vadd.f32 %v2331_v32, %v2330_v31  ;;  %v2329_v35 = vsel %vm3642_vm12, %v3017_v33, 0.0 }
 0xfdb   :  { %v2337_v36 = vsel %vm355_vm10, %v2329_v35, 0.0  ;;  %vm2565_vm10 = vcmp.ge.s32.totalorder %v2270_v4, 0 }
 0xfdc   :  { %v2333_v37 = vrot.slane %v2332_v34, 2  ;;  %v2338_v38 = vrot.slane %v2337_v36, 4  ;;  %v2581_v45 = vsel %vm2565_vm10, 1, %v3125_v1 }
 0xfde   :  { %v2334_v39 = vadd.f32 %v2333_v37, %v2332_v34  ;;  %v2339_v40 = vadd.f32 %v2338_v38, %v2337_v36 }
 0xfe0   :  { %v2335_v41 = vrot.slane %v2334_v39, 1  ;;  %v2340_v42 = vrot.slane %v2339_v40, 2 }
 0xfe2   :  { %v2336_v43 = vadd.f32 %v2335_v41, %v2334_v39  ;;  %v2341_v44 = vadd.f32 %v2340_v42, %v2339_v40 }
 0xfe4   :  { %3018 = vrcp.f32 %v2336_v43  ;;  %v2342_v46 = vrot.slane %v2341_v44, 1 }
 0xfe6   :  { %v2343_v47 = vadd.f32 %v2342_v46, %v2341_v44 }
 0xfe8   :  { %3020 = vrcp.f32 %v2343_v47 }
 0xfee   :  { %v3019_v48 = vpop.eup %3018 }
 0xfef   :  { %v2345_v15 = vmul.f32 %v3019_v48, %v2328_v30 }
 0xff1   :  { %2348 = vxpose.xlu0.b32.start.end [1/1] (short) (narrow) %v2345_v15, 8 }
 0xff2   :  { %v3021_v50 = vpop.eup %3020 }
 0xff3   :  { %v2347_v51 = vmul.f32 %v3021_v50, %v2329_v35 }
 0xff5   :  { %2453 = vxpose.xlu1.b32.start.end [1/1] (short) (narrow) %v2347_v51, 8 }
0x1013   :  { %2574 = vperm.xlu1 %2941, %v2569_v52  }
0x1017   :  { %2586 = vperm.xlu1 %2941, %v2581_v45  }
0x101a   :  { %2571 = vperm.xlu0 %2940, %v2568_v53  }
0x101e   :  { %2583 = vperm.xlu0 %2940, %v2580_v54  }
0x1071   :  { %v2364_v58 = vpop.trf.xlu0 }
0x1072   :  { %2889 = vmatmul.mubr.msk.f32.vlgmr.msra.gmra.mrb[12].mxu0 %vm428_vm2, %v2364_v58 }
0x1073   :  { %2926 = vmatpush3.bf16.msra.mxu0 %v3618_v63  ;;  %2904 = vmatprep.mubr.msk.f32.mxu0 %vm90_vm0, %v2594_v59 }
0x1074   :  { %2928 = vmatprep.subr.bf16.mxu0 %v2927_v57 }
0x1075   :  { %v2469_v60 = vpop.trf.xlu1 }
0x1076   :  { %2894 = vmatmul.mubr.msk.f32.vlgmr.msra.gmra.mrb[16].mxu1 %vm428_vm2, %v2469_v60 }
0x1077   :  { %2930 = vmatpush3.bf16.msra.mxu0 %v2927_v57 }
0x107a   :  { %2905 = vmatmul.mubr.msk.f32.vlgmr.msra.gmra.mrb[14].mxu0 %vm90_vm0, %v2595_v61 }
0x1092   :  { %v2575_v5 = vpop.permute.xlu1 %2574 }
0x1093   :  { %vm2577_vm3 = vcmp.eq.s32.totalorder %v2575_v5, 1 }
0x1094   :  { %v2579_v2 = vsel %vm2577_vm3, %v2561_v49, %v2563_v14 }
0x1096   :  { %v2587_v12 = vpop.permute.xlu1 %2586 }
0x1097   :  { %vm2589_vm5 = vcmp.eq.s32.totalorder %v2587_v12, 1 }
0x1099   :  { %v2572_v0 = vpop.permute.xlu0 %2571 }
0x109a   :  { %vm2576_vm1 = vcmp.eq.s32.totalorder %v2572_v0, 1 }
0x109b   :  { %v2578_v11 = vsel %vm2576_vm1, %v2560_v8, %v2562_v9 }
0x109d   :  { %v2584_v63 = vpop.permute.xlu0 %2583 }
0x109e   :  { %vm2588_vm2 = vcmp.eq.s32.totalorder %v2584_v63, 1 }
0x1145   :  { %v2449_v1 = vpop.f32.mrb[12].mxu0 }
0x1146   :  { %3022 = vtanh.f32 %v2449_v1  ;;  %v2890_v62 = vpop.f32.mrb[13].mxu0 }
0x1149   :  { %v2554_v3 = vpop.f32.mrb[16].mxu1 }
0x114a   :  { %3024 = vtanh.f32 %v2554_v3  ;;  %v2895_v4 = vpop.f32.mrb[17].mxu1 }
0x114d   :  { %v2906_v6 = vpop.f32.mrb[14].mxu0 }
0x114e   :  { %v2681_v7 = vpop.f32.mrb[15].mxu0  ;;  %v2687_v22 = vadd.f32 %v2906_v6, %v2755_v18 }
0x114f   :  { %v2682_v19 = vadd.f32 %v2755_v18, %v2681_v7 }
0x1150   :  { %v3023_v10 = vpop.eup %3022 }
0x1151   :  { %v2590_v13 = vsel %vm2588_vm2, %v3023_v10, %v2578_v11 }
0x1152   :  { %2592 = vst.msk [vmem:[#allocation10 + $0x7] sm:$0x1] %vm641_vm4, %v2590_v13 }
0x1154   :  { %v3025_v16 = vpop.eup %3024 }
0x1155   :  { %v2591_v17 = vsel %vm2589_vm5, %v3025_v16, %v2579_v2 }
0x1156   :  { %2593 = vst.msk [vmem:[#allocation10 + $0xf] sm:$0x1] %vm641_vm4, %v2591_v17 }
0x1159   :  { %v2596_v20 = vld [vmem:[#allocation10] sm:$0xff] }
0x115a   :  { %v2690_v21 = vmul.f32 %v2682_v19, %v2596_v20 }
0x115c   :  { %v2692_v23 = vmax.f32 %v2690_v21, 0.0 }
0x115d   :  { %v2597_v24 = vld [vmem:[#allocation10 + $0x8] sm:$0xff] }
0x115e   :  { %v2691_v25 = vmul.f32 %v2687_v22, %v2597_v24  ;;  %v2694_v26 = vadd.f32 %v2692_v23, %v2594_v59 }
0x1160   :  { %v2693_v27 = vmax.f32 %v2691_v25, 0.0  ;;  %2696 = vst.msk [vmem:[#allocation10] sm:$0xff] %vm90_vm0, %v2694_v26 }
0x1162   :  { %v2695_v28 = vadd.f32 %v2693_v27, %v2595_v61 }
0x1164   :  { %2697 = vst.msk [vmem:[#allocation10 + $0x8] sm:$0xff] %vm90_vm0, %v2695_v28 }
0x1165   :  { %3103 = shalt.err (!%p3100_p0)
}
0x1166   :  { %s3104_s16 = scalar_lea.hbm %s3698_s10, 256 }
0x1167   :  { %p3105_p1 = scmp.ne.s32.totalorder %s3698_s10, %s3104_s16  ;;  %p3108_p2 = scmp.lt.u32.totalorder %s3104_s16, %s3698_s10 }
0x1169   :  { %p3110_p3 = pnand %p3108_p2, %p3105_p1 }
0x116b   :  { %3113 = shalt.err (!%p3110_p3)
}
0x116c   :  { %2709 = dma.vmem_to_hbm [thread:$0]  %s2704_s29, 256, %s3698_s10, [#allocation6], %s3122_s25, %s3122_s25, %s3123_s26  }
0x116d   :  { %3118 = dma.done.wait [#allocation6], 256  }
0x116e   :  { %3119 = vsyncadd [#allocation6], 4294967040 }
0x116f   :  { %2713 = vsyncpa [#allocation5], 1 }
0x1170   :  { %2714 = vsyncpa [#allocation8], 1 }
0x1171   :  { %2715 = vsyncpa [#allocation6], 1 }

</bundles_post_ra>
